<compile_context>
chip_gen: v6e
topology: v6e:2x2x1
jax: 0.10.0
libtpu: 0.0.40
codegen_flags: <defaults>
</compile_context>

<pallas_src>
import numpy as np
import jax
import jax.numpy as jnp
from jax.experimental import pallas as pl
from jax.experimental.pallas import tpu as pltpu


# ---------------------------------------------------------------------------
# SincConv_fast filter construction (deterministic parameter synthesis in NumPy;
# the convolution itself runs inside the Pallas kernel below).
# ---------------------------------------------------------------------------
def make_sinc_filters(out_channels, kernel_size, sample_rate=16000,
                      min_low_hz=0.0, min_band_hz=0.0):
    to_mel = lambda hz: 2595.0 * np.log10(1.0 + hz / 700.0)
    to_hz = lambda mel: 700.0 * (10.0 ** (mel / 2595.0) - 1.0)

    low_hz = 30.0
    high_hz = sample_rate / 2.0 - (min_low_hz + min_band_hz)
    mel = np.linspace(to_mel(low_hz), to_mel(high_hz), out_channels + 1)
    hz = to_hz(mel)
    low_hz_ = hz[:-1].reshape(-1, 1)
    band_hz_ = np.diff(hz).reshape(-1, 1)

    n_lin = np.linspace(0, (kernel_size / 2) - 1, int(kernel_size / 2))
    window = 0.54 - 0.46 * np.cos(2 * np.pi * n_lin / kernel_size)
    n = (kernel_size - 1) / 2.0
    n_ = 2 * np.pi * np.arange(-n, 0).reshape(1, -1) / sample_rate

    low = min_low_hz + np.abs(low_hz_)
    high = np.clip(low + min_band_hz + np.abs(band_hz_),
                   min_low_hz, sample_rate / 2.0)
    band = (high - low)[:, 0]

    f_low = low @ n_
    f_high = high @ n_
    bp_left = ((np.sin(f_high) - np.sin(f_low)) / (n_ / 2.0)) * window
    bp_center = 2.0 * band.reshape(-1, 1)
    bp_right = bp_left[:, ::-1]
    bp = np.concatenate([bp_left, bp_center, bp_right], axis=1)
    bp = bp / (2.0 * band[:, None])
    return bp.astype(np.float32)                   # (C, K)


# ---------------------------------------------------------------------------
# Fused encoder kernel factory.  One batch element per grid step.
# ---------------------------------------------------------------------------
def _make_encoder_kernel(cfg):
    K = cfg['K']
    C1 = cfg['C1']
    slope = cfg['slope']
    offs = cfg['offs']
    blocks = cfg['blocks']      # list of dicts with static shapes + slab row offsets

    def leaky(v):
        return jnp.where(v >= 0, v, slope * v)

    def kernel(patch_ref, vec_ref, mat_ref, o_ref, pool_ref):
        def vrow(off, c):
            # one packed (1, c) parameter row (BN affine / bias)
            return vec_ref[off:off + 1, 0:c]

        def mat(off, r, c):
            # packed (r, c) matrix at an 8-aligned row offset
            return mat_ref[off:off + r, 0:c]

        def maxpool3(val):
            # MaxPool1d(kernel=3, stride=3): window max in vregs (XLU rolls), ONE store,
            # ONE stride-3 sublane read.  Centered form max(x[t-1], x[t], x[t+1]) read at
            # rows 1, 4, 7, ... so the wrapped rows (0 and T-1) are never read.
            t, c = val.shape
            tp = t // 3
            m = jnp.maximum(jnp.maximum(pltpu.roll(val, 1, axis=0), val),
                            pltpu.roll(val, t - 1, axis=0))
            pool_ref[0:t, 0:c] = m
            return pool_ref[pl.ds(1, tp, stride=3), :][:, 0:c]

        def conv3(h, w_off, b_off, cin, cout):
            # Conv1d(kernel=3, padding=1): shifted operands via XLU rolls + boundary-row
            # masks (no padded-scratch round trip), three MXU dots.
            # NOTE: kept as 3 dots at toy channel counts; for Cin >= 128 fuse into one
            #       (T, 3*Cin) x (3*Cin, Cout) dot (the slab already stores w contiguously).
            t, _ = h.shape
            row = jax.lax.broadcasted_iota(jnp.int32, (t, cin), 0)
            h_prev = jnp.where(row == 0, 0.0, pltpu.roll(h, 1, axis=0))          # x[t-1]
            h_next = jnp.where(row == t - 1, 0.0, pltpu.roll(h, t - 1, axis=0))  # x[t+1]
            acc = jnp.dot(h_prev, mat(w_off, cin, cout),
                          preferred_element_type=jnp.float32)
            acc = acc + jnp.dot(h, mat(w_off + cin, cin, cout),
                                preferred_element_type=jnp.float32)
            acc = acc + jnp.dot(h_next, mat(w_off + 2 * cin, cin, cout),
                                preferred_element_type=jnp.float32)
            return acc + vrow(b_off, cout)

        # ---- stage 1: SincConv (valid) = ONE MXU matmul on wrapper-built patches ----
        conv = jnp.dot(patch_ref[0], mat(offs['sinc'], K, C1),
                       preferred_element_type=jnp.float32)                 # (T1, C1)
        # abs -> MaxPool1d(3) -> BatchNorm1d(eval) -> LeakyReLU
        pooled = maxpool3(jnp.abs(conv))                                   # (T2, C1)
        h = leaky(pooled * vrow(offs['post_s'], C1) + vrow(offs['post_b'], C1))

        # ---- ResidualBlockWithFMS stack (statically unrolled) ----
        for blk in blocks:
            t, cin, cout = blk['T'], blk['Cin'], blk['Cout']
            # body = BN -> LeakyReLU -> Conv1d(3) -> BN -> LeakyReLU -> Conv1d(3)
            u = leaky(h * vrow(blk['bn1s'], cin) + vrow(blk['bn1b'], cin))
            c1 = conv3(u, blk['w1'], blk['b1'], cin, cout)
            v = leaky(c1 * vrow(blk['bn2s'], cout) + vrow(blk['bn2b'], cout))
            c2 = conv3(v, blk['w2'], blk['b2'], cout, cout)
            # residual path: 1x1 conv or identity (decided statically)
            if blk['has_ds']:
                res = jnp.dot(h, mat(blk['wds'], cin, cout),
                              preferred_element_type=jnp.float32) + vrow(blk['bds'], cout)
            else:
                res = h
            r = c2 + res                                                    # (t, cout)

            # MaxPool1d(3), then FMS: s = sigmoid(Linear(mean_t)), out = out*s + s
            pooled = maxpool3(r)                                            # (t//3, cout)
            mean = jnp.sum(pooled, axis=0, keepdims=True) * (1.0 / (t // 3))
            z = jnp.dot(mean, mat(blk['wlin'], cout, cout),
                        preferred_element_type=jnp.float32) + vrow(blk['blin'], cout)
            gate = pl.reciprocal(1.0 + jnp.exp(-z), approx=True)            # sigmoid (EUP)
            h = pooled * gate + gate

        # Lane-sparse only at toy C (C_out=16 -> 512 B per batch elt, negligible);
        # at production C >= 128 this store is already lane-dense.
        o_ref[0] = h

    return kernel


# ---------------------------------------------------------------------------
# Parameter slab packing: all tiny params -> 2 concatenated f32 slabs (few DMAs).
# ---------------------------------------------------------------------------
class _Slab:
    """Row-concatenates small f32 params into one 2-D slab; records static row offsets."""

    def __init__(self, c_max, row_align=1):
        self.c_max = c_max
        self.row_align = row_align
        self.chunks = []
        self.n_rows = 0

    def add(self, a):
        a = jnp.asarray(a, jnp.float32)
        if a.ndim == 1:
            a = a[None, :]
        pad = (-self.n_rows) % self.row_align
        if pad:
            self.chunks.append(jnp.zeros((pad, self.c_max), jnp.float32))
            self.n_rows += pad
        off = self.n_rows
        r, c = a.shape
        self.chunks.append(jnp.pad(a, ((0, 0), (0, self.c_max - c))))
        self.n_rows += r
        return off

    def finalize(self):
        pad = (-self.n_rows) % 8
        if pad:
            self.chunks.append(jnp.zeros((pad, self.c_max), jnp.float32))
            self.n_rows += pad
        return jnp.concatenate(self.chunks, axis=0)


def rawnet_encoder_forward(x, params, slope=0.2):
    # x: (B, T_in) raw waveform (PyTorch forward does the unsqueeze(1) itself).
    B, T_in = x.shape
    filt_t = params['sinc_filt_t']                       # (K, C1)
    K, C1 = int(filt_t.shape[0]), int(filt_t.shape[1])
    T1 = T_in - K + 1                                    # valid sinc conv length
    assert T1 % 3 == 0, "post-sinc length must be divisible by 3 (MaxPool1d(3))"
    T2 = T1 // 3

    # Lane-dense im2col done in the wrapper: (B, T1, K) patches -> one dense DMA and one
    # MXU matmul inside the kernel (replaces the per-tap 1-lane scratch-column loop).
    patches = jnp.stack([x[:, k:k + T1] for k in range(K)], axis=-1)

    # ---- static block metadata + parameter packing ----
    c_max = C1
    blocks_meta = []
    t = T2
    for p in params['blocks']:
        cin = int(p['bn1_scale'].shape[1])
        cout = int(p['b1'].shape[1])
        assert t % 3 == 0, "each residual block input length must be divisible by 3"
        blocks_meta.append(dict(T=t, Cin=cin, Cout=cout, has_ds=bool(p['has_ds'])))
        c_max = max(c_max, cin, cout)
        t //= 3
    T_out = t
    C_out = blocks_meta[-1]['Cout']

    vec = _Slab(c_max, row_align=1)   # all (1, C) vectors: BN affine, conv/linear biases
    mat = _Slab(c_max, row_align=8)   # all matrices, 8-row-aligned: sinc filt, convs, linears
    offs = dict(sinc=mat.add(filt_t),
                post_s=vec.add(params['post_bn_scale']),
                post_b=vec.add(params['post_bn_shift']))
    for meta, p in zip(blocks_meta, params['blocks']):
        cin, cout = meta['Cin'], meta['Cout']
        meta['bn1s'] = vec.add(p['bn1_scale'])
        meta['bn1b'] = vec.add(p['bn1_shift'])
        meta['w1'] = mat.add(jnp.reshape(p['w1'], (3 * cin, cout)))   # (3,Cin,Cout)->(3Cin,Cout)
        meta['b1'] = vec.add(p['b1'])
        meta['bn2s'] = vec.add(p['bn2_scale'])
        meta['bn2b'] = vec.add(p['bn2_shift'])
        meta['w2'] = mat.add(jnp.reshape(p['w2'], (3 * cout, cout)))
        meta['b2'] = vec.add(p['b2'])
        if meta['has_ds']:
            meta['wds'] = mat.add(p['wds'])
            meta['bds'] = vec.add(p['bds'])
        meta['wlin'] = mat.add(p['wlin_t'])
        meta['blin'] = vec.add(p['blin'])
    vec_slab = vec.finalize()
    mat_slab = mat.finalize()

    cfg = dict(K=K, T1=T1, C1=C1, slope=slope, offs=offs, blocks=blocks_meta)
    kernel = _make_encoder_kernel(cfg)

    # All activations + packed weights fit in VMEM at these shapes; no intermediate HBM traffic.
    # (Dot inputs kept f32 for fidelity at toy C; cast to bf16 at production channel counts.)
    out = pl.pallas_call(
        kernel,
        out_shape=jax.ShapeDtypeStruct((B, T_out, C_out), jnp.float32),
        grid=(B,),
        in_specs=[
            pl.BlockSpec((1, T1, K), lambda b: (b, 0, 0)),
            pl.BlockSpec(vec_slab.shape, lambda b: (0, 0)),   # replicated -> DMA'd once
            pl.BlockSpec(mat_slab.shape, lambda b: (0, 0)),   # replicated -> DMA'd once
        ],
        out_specs=pl.BlockSpec((1, T_out, C_out), lambda b: (b, 0, 0)),
        scratch_shapes=[pltpu.VMEM((T1, c_max), jnp.float32)],   # shared pre-pool scratch
        compiler_params=pltpu.CompilerParams(
            dimension_semantics=("parallel",),        # batch split across TCs on v7x
            vmem_limit_bytes=32 * 1024 * 1024,
        ),
    )(patches, vec_slab, mat_slab)
    return jnp.transpose(out, (0, 2, 1))              # (B, C_out, T_out), PyTorch NCT


# ---------------------------------------------------------------------------
# Pure-JAX (non-Pallas) reference of the same forward, for validation.
# ---------------------------------------------------------------------------
def reference_forward(x, params, slope=0.2):
    filt = params['sinc_filt_t']                       # (K, C1)
    K = int(filt.shape[0])
    T1 = x.shape[1] - K + 1
    patches = jnp.stack([x[:, k:k + T1] for k in range(K)], axis=-1)   # (B, T1, K)
    h = jnp.abs(jnp.einsum('btk,kc->btc', patches, filt))

    def leaky(v):
        return jnp.where(v >= 0, v, slope * v)

    def pool3(a):                                      # (B, T, C) -> (B, T//3, C)
        b_, t_, c_ = a.shape
        return jnp.max(a[:, :t_ - t_ % 3].reshape(b_, t_ // 3, 3, c_), axis=2)

    def conv3(a, w, bias):                             # w: (3, Cin, Cout), bias: (1, Cout)
        t_ = a.shape[1]
        ap = jnp.pad(a, ((0, 0), (1, 1), (0, 0)))
        return (jnp.einsum('btc,cd->btd', ap[:, 0:t_], w[0])
                + jnp.einsum('btc,cd->btd', ap[:, 1:t_ + 1], w[1])
                + jnp.einsum('btc,cd->btd', ap[:, 2:t_ + 2], w[2]) + bias[None])

    h = leaky(pool3(h) * params['post_bn_scale'][None] + params['post_bn_shift'][None])
    for p in params['blocks']:
        u = leaky(h * p['bn1_scale'][None] + p['bn1_shift'][None])
        c1 = conv3(u, p['w1'], p['b1'])
        v = leaky(c1 * p['bn2_scale'][None] + p['bn2_shift'][None])
        c2 = conv3(v, p['w2'], p['b2'])
        if p['has_ds']:
            res = jnp.einsum('btc,cd->btd', h, p['wds']) + p['bds'][None]
        else:
            res = h
        pooled = pool3(c2 + res)
        z = jnp.mean(pooled, axis=1) @ p['wlin_t'] + p['blin']
        gate = jax.nn.sigmoid(z)[:, None, :]
        h = pooled * gate + gate
    return jnp.transpose(h, (0, 2, 1))                 # (B, C_out, T_out)


# ---------------------------------------------------------------------------
# Parameters (deterministic, synthetic).
# ---------------------------------------------------------------------------
class _KeyGen:
    def __init__(self, key):
        self.key = key

    def __call__(self):
        self.key, sub = jax.random.split(self.key)
        return sub


def init_params(key, sinc_channels, sinc_kernel, res_channels,
                sample_rate=16000, min_low_hz=0.0, min_band_hz=0.0, eps=1e-5):
    kg = _KeyGen(key)

    filt = make_sinc_filters(sinc_channels, sinc_kernel, sample_rate,
                             min_low_hz, min_band_hz)        # (C, K)
    params = {'sinc_filt_t': jnp.asarray(filt.T)}            # (K, C)

    def bn(C):
        gamma = 1.0 + 0.1 * jax.random.normal(kg(), (1, C), jnp.float32)
        beta = 0.1 * jax.random.normal(kg(), (1, C), jnp.float32)
        rmean = 0.1 * jax.random.normal(kg(), (1, C), jnp.float32)
        rvar = 1.0 + 0.2 * jax.random.uniform(kg(), (1, C), jnp.float32)
        scale = gamma / jnp.sqrt(rvar + eps)
        shift = beta - rmean * scale
        return scale, shift

    def conv(cout, cin, k):
        w = jax.random.normal(kg(), (cout, cin, k), jnp.float32) / np.sqrt(cin * k)
        b = 0.05 * jax.random.normal(kg(), (cout,), jnp.float32)
        return w, b

    params['post_bn_scale'], params['post_bn_shift'] = bn(sinc_channels)

    blocks = []
    for cin, cout in res_channels:
        p = {'has_ds': cin != cout}
        p['bn1_scale'], p['bn1_shift'] = bn(cin)
        w1, b1 = conv(cout, cin, 3)
        p['w1'] = jnp.transpose(w1, (2, 1, 0))               # (3, Cin, Cout)
        p['b1'] = b1[None, :]
        p['bn2_scale'], p['bn2_shift'] = bn(cout)
        w2, b2 = conv(cout, cout, 3)
        p['w2'] = jnp.transpose(w2, (2, 1, 0))
        p['b2'] = b2[None, :]
        if p['has_ds']:
            wds, bds = conv(cout, cin, 1)
            p['wds'] = jnp.transpose(wds[:, :, 0], (1, 0))   # (Cin, Cout)
            p['bds'] = bds[None, :]
        wl = jax.random.normal(kg(), (cout, cout), jnp.float32) / np.sqrt(cout)
        bl = 0.05 * jax.random.normal(kg(), (cout,), jnp.float32)
        p['wlin_t'] = jnp.transpose(wl, (1, 0))              # y = x @ W.T + b
        p['blin'] = bl[None, :]
        blocks.append(p)
    params['blocks'] = blocks
    return params


if __name__ == "__main__":
    B = 2
    sinc_channels = 8
    sinc_kernel = 17
    res_channels = [[8, 8], [8, 16]]
    slope = 0.2
    # lengths: 232 -(sinc valid)-> 216 -(pool3)-> 72 -(block1 pool3)-> 24 -(block2 pool3)-> 8
    T_in = 232

    key = jax.random.PRNGKey(0)
    kp, kx = jax.random.split(key)
    params = init_params(kp, sinc_channels, sinc_kernel, res_channels)
    x = jax.random.normal(kx, (B, T_in), jnp.float32)

    out = jax.block_until_ready(rawnet_encoder_forward(x, params, slope))
    assert out.shape == (B, res_channels[-1][1], 8), out.shape
    assert bool(jnp.all(jnp.isfinite(out)))

    # validate against a pure-JAX reference (loose bound: approx-reciprocal sigmoid +
    # MXU default-precision matmuls produce small numeric deltas).
    ref = jax.block_until_ready(reference_forward(x, params, slope))
    err = float(jnp.max(jnp.abs(out - ref)))
    scale = float(jnp.max(jnp.abs(ref)))
    assert err <= 0.05 * scale + 0.05, f"mismatch vs reference: max|diff|={err}, max|ref|={scale}"
    print("KERNEL_OK")
</pallas_src>

<mosaic_0001>
module attributes {stable_mosaic.version = 11 : i64} {
  func.func @kernel(%arg0: i32, %arg1: memref<1x216x17xf32, #tpu.memory_space<vmem>>, %arg2: memref<24x16xf32, #tpu.memory_space<vmem>>, %arg3: memref<176x16xf32, #tpu.memory_space<vmem>>, %arg4: memref<1x8x16xf32, #tpu.memory_space<vmem>>, %arg5: memref<216x16xf32, #tpu.memory_space<vmem>>) attributes {dimension_semantics = [#tpu.dimension_semantics<parallel>], iteration_bounds = array<i64: 2>, scalar_prefetch = 0 : i64, scratch_operands = 1 : i64, tpu.core_type = #tpu.core_type<tc>, window_params = [{transform_indices = @transform_0, window_bounds = array<i64: 1, 216, 17>}, {pipeline_mode = #tpu.pipeline_mode<synchronous>, transform_indices = @transform_1, window_bounds = array<i64: 24, 16>}, {pipeline_mode = #tpu.pipeline_mode<synchronous>, transform_indices = @transform_2, window_bounds = array<i64: 176, 16>}, {transform_indices = @transform_3, window_bounds = array<i64: 1, 8, 16>}]} {
    %c0 = arith.constant 0 : index
    %c0_0 = arith.constant 0 : index
    %c0_1 = arith.constant 0 : index
    %0 = vector.load %arg1[%c0, %c0_0, %c0_1] : memref<1x216x17xf32, #tpu.memory_space<vmem>>, vector<1x216x17xf32>
    %1 = vector.shape_cast %0 : vector<1x216x17xf32> to vector<216x17xf32>
    %c0_2 = arith.constant 0 : index
    %c0_3 = arith.constant 0 : index
    %2 = vector.load %arg3[%c0_2, %c0_3] : memref<176x16xf32, #tpu.memory_space<vmem>>, vector<17x8xf32>
    %cst = arith.constant dense<0.000000e+00> : vector<216x8xf32>
    %3 = tpu.matmul %1, %2, %cst {dimension_numbers = #tpu.dot_dimension_numbers<[1], [0], [0], [1], [0, 0, 1, 1], [], []>} : vector<216x17xf32>, vector<17x8xf32>, vector<216x8xf32> -> vector<216x8xf32>
    %4 = math.absf %3 : vector<216x8xf32>
    %c1_i32 = arith.constant 1 : i32
    %5 = tpu.dynamic_rotate %4 by %c1_i32 dim 0 : vector<216x8xf32>, i32 -> vector<216x8xf32>
    %6 = arith.maximumf %5, %4 : vector<216x8xf32>
    %c215_i32 = arith.constant 215 : i32
    %7 = tpu.dynamic_rotate %4 by %c215_i32 dim 0 : vector<216x8xf32>, i32 -> vector<216x8xf32>
    %8 = arith.maximumf %6, %7 : vector<216x8xf32>
    %c0_4 = arith.constant 0 : index
    %c0_5 = arith.constant 0 : index
    %9 = vector.load %arg5[%c0_4, %c0_5] : memref<216x16xf32, #tpu.memory_space<vmem>>, vector<216x8xf32>
    tpu.vector_store %arg5[%c0_4, %c0_5], %8 {strides = array<i32>} : memref<216x16xf32, #tpu.memory_space<vmem>>, vector<216x8xf32>,
    %c1 = arith.constant 1 : index
    %c0_6 = arith.constant 0 : index
    %10 = tpu.strided_load %arg5[%c1, %c0_6] {strides = array<i32: 3, 1>} : memref<216x16xf32, #tpu.memory_space<vmem>>, vector<72x16xf32>
    %11 = vector.extract_strided_slice %10 {offsets = [0, 0], sizes = [72, 8], strides = [1, 1]} : vector<72x16xf32> to vector<72x8xf32>
    %c0_7 = arith.constant 0 : index
    %c0_8 = arith.constant 0 : index
    %12 = vector.load %arg2[%c0_7, %c0_8] : memref<24x16xf32, #tpu.memory_space<vmem>>, vector<1x8xf32>
    %13 = vector.broadcast %12 : vector<1x8xf32> to vector<72x8xf32>
    %14 = arith.mulf %11, %13 : vector<72x8xf32>
    %c1_9 = arith.constant 1 : index
    %c0_10 = arith.constant 0 : index
    %15 = vector.load %arg2[%c1_9, %c0_10] : memref<24x16xf32, #tpu.memory_space<vmem>>, vector<1x8xf32>
    %16 = vector.broadcast %15 : vector<1x8xf32> to vector<72x8xf32>
    %17 = arith.addf %14, %16 : vector<72x8xf32>
    %cst_11 = arith.constant 0.000000e+00 : f32
    %18 = vector.broadcast %cst_11 : f32 to vector<72x8xf32>
    %19 = arith.cmpf oge, %17, %18 : vector<72x8xf32>
    %cst_12 = arith.constant 2.000000e-01 : f32
    %20 = vector.broadcast %cst_12 : f32 to vector<72x8xf32>
    %21 = arith.mulf %20, %17 : vector<72x8xf32>
    %22 = arith.select %19, %17, %21 : vector<72x8xi1>, vector<72x8xf32>
    %c2 = arith.constant 2 : index
    %c0_13 = arith.constant 0 : index
    %23 = vector.load %arg2[%c2, %c0_13] : memref<24x16xf32, #tpu.memory_space<vmem>>, vector<1x8xf32>
    %24 = vector.broadcast %23 : vector<1x8xf32> to vector<72x8xf32>
    %25 = arith.mulf %22, %24 : vector<72x8xf32>
    %c3 = arith.constant 3 : index
    %c0_14 = arith.constant 0 : index
    %26 = vector.load %arg2[%c3, %c0_14] : memref<24x16xf32, #tpu.memory_space<vmem>>, vector<1x8xf32>
    %27 = vector.broadcast %26 : vector<1x8xf32> to vector<72x8xf32>
    %28 = arith.addf %25, %27 : vector<72x8xf32>
    %cst_15 = arith.constant 0.000000e+00 : f32
    %29 = vector.broadcast %cst_15 : f32 to vector<72x8xf32>
    %30 = arith.cmpf oge, %28, %29 : vector<72x8xf32>
    %cst_16 = arith.constant 2.000000e-01 : f32
    %31 = vector.broadcast %cst_16 : f32 to vector<72x8xf32>
    %32 = arith.mulf %31, %28 : vector<72x8xf32>
    %33 = arith.select %30, %28, %32 : vector<72x8xi1>, vector<72x8xf32>
    %34 = tpu.iota {dimensions = array<i32: 0>} : vector<72x8xi32>
    %c0_i32 = arith.constant 0 : i32
    %35 = vector.broadcast %c0_i32 : i32 to vector<72x8xi32>
    %36 = arith.cmpi eq, %34, %35 : vector<72x8xi32>
    %c1_i32_17 = arith.constant 1 : i32
    %37 = tpu.dynamic_rotate %33 by %c1_i32_17 dim 0 : vector<72x8xf32>, i32 -> vector<72x8xf32>
    %cst_18 = arith.constant 0.000000e+00 : f32
    %38 = vector.broadcast %cst_18 : f32 to vector<72x8xf32>
    %39 = arith.select %36, %38, %37 : vector<72x8xi1>, vector<72x8xf32>
    %c71_i32 = arith.constant 71 : i32
    %40 = vector.broadcast %c71_i32 : i32 to vector<72x8xi32>
    %41 = arith.cmpi eq, %34, %40 : vector<72x8xi32>
    %c71_i32_19 = arith.constant 71 : i32
    %42 = tpu.dynamic_rotate %33 by %c71_i32_19 dim 0 : vector<72x8xf32>, i32 -> vector<72x8xf32>
    %cst_20 = arith.constant 0.000000e+00 : f32
    %43 = vector.broadcast %cst_20 : f32 to vector<72x8xf32>
    %44 = arith.select %41, %43, %42 : vector<72x8xi1>, vector<72x8xf32>
    %c24 = arith.constant 24 : index
    %c0_21 = arith.constant 0 : index
    %45 = vector.load %arg3[%c24, %c0_21] : memref<176x16xf32, #tpu.memory_space<vmem>>, vector<8x8xf32>
    %cst_22 = arith.constant dense<0.000000e+00> : vector<72x8xf32>
    %46 = tpu.matmul %39, %45, %cst_22 {dimension_numbers = #tpu.dot_dimension_numbers<[1], [0], [0], [1], [0, 0, 1, 1], [], []>} : vector<72x8xf32>, vector<8x8xf32>, vector<72x8xf32> -> vector<72x8xf32>
    %c32 = arith.constant 32 : index
    %c0_23 = arith.constant 0 : index
    %47 = vector.load %arg3[%c32, %c0_23] : memref<176x16xf32, #tpu.memory_space<vmem>>, vector<8x8xf32>
    %cst_24 = arith.constant dense<0.000000e+00> : vector<72x8xf32>
    %48 = tpu.matmul %33, %47, %cst_24 {dimension_numbers = #tpu.dot_dimension_numbers<[1], [0], [0], [1], [0, 0, 1, 1], [], []>} : vector<72x8xf32>, vector<8x8xf32>, vector<72x8xf32> -> vector<72x8xf32>
    %49 = arith.addf %46, %48 : vector<72x8xf32>
    %c40 = arith.constant 40 : index
    %c0_25 = arith.constant 0 : index
    %50 = vector.load %arg3[%c40, %c0_25] : memref<176x16xf32, #tpu.memory_space<vmem>>, vector<8x8xf32>
    %cst_26 = arith.constant dense<0.000000e+00> : vector<72x8xf32>
    %51 = tpu.matmul %44, %50, %cst_26 {dimension_numbers = #tpu.dot_dimension_numbers<[1], [0], [0], [1], [0, 0, 1, 1], [], []>} : vector<72x8xf32>, vector<8x8xf32>, vector<72x8xf32> -> vector<72x8xf32>
    %52 = arith.addf %49, %51 : vector<72x8xf32>
    %c4 = arith.constant 4 : index
    %c0_27 = arith.constant 0 : index
    %53 = vector.load %arg2[%c4, %c0_27] : memref<24x16xf32, #tpu.memory_space<vmem>>, vector<1x8xf32>
    %54 = vector.broadcast %53 : vector<1x8xf32> to vector<72x8xf32>
    %55 = arith.addf %52, %54 : vector<72x8xf32>
    %c5 = arith.constant 5 : index
    %c0_28 = arith.constant 0 : index
    %56 = vector.load %arg2[%c5, %c0_28] : memref<24x16xf32, #tpu.memory_space<vmem>>, vector<1x8xf32>
    %57 = vector.broadcast %56 : vector<1x8xf32> to vector<72x8xf32>
    %58 = arith.mulf %55, %57 : vector<72x8xf32>
    %c6 = arith.constant 6 : index
    %c0_29 = arith.constant 0 : index
    %59 = vector.load %arg2[%c6, %c0_29] : memref<24x16xf32, #tpu.memory_space<vmem>>, vector<1x8xf32>
    %60 = vector.broadcast %59 : vector<1x8xf32> to vector<72x8xf32>
    %61 = arith.addf %58, %60 : vector<72x8xf32>
    %cst_30 = arith.constant 0.000000e+00 : f32
    %62 = vector.broadcast %cst_30 : f32 to vector<72x8xf32>
    %63 = arith.cmpf oge, %61, %62 : vector<72x8xf32>
    %cst_31 = arith.constant 2.000000e-01 : f32
    %64 = vector.broadcast %cst_31 : f32 to vector<72x8xf32>
    %65 = arith.mulf %64, %61 : vector<72x8xf32>
    %66 = arith.select %63, %61, %65 : vector<72x8xi1>, vector<72x8xf32>
    %67 = tpu.iota {dimensions = array<i32: 0>} : vector<72x8xi32>
    %c0_i32_32 = arith.constant 0 : i32
    %68 = vector.broadcast %c0_i32_32 : i32 to vector<72x8xi32>
    %69 = arith.cmpi eq, %67, %68 : vector<72x8xi32>
    %c1_i32_33 = arith.constant 1 : i32
    %70 = tpu.dynamic_rotate %66 by %c1_i32_33 dim 0 : vector<72x8xf32>, i32 -> vector<72x8xf32>
    %cst_34 = arith.constant 0.000000e+00 : f32
    %71 = vector.broadcast %cst_34 : f32 to vector<72x8xf32>
    %72 = arith.select %69, %71, %70 : vector<72x8xi1>, vector<72x8xf32>
    %c71_i32_35 = arith.constant 71 : i32
    %73 = vector.broadcast %c71_i32_35 : i32 to vector<72x8xi32>
    %74 = arith.cmpi eq, %67, %73 : vector<72x8xi32>
    %c71_i32_36 = arith.constant 71 : i32
    %75 = tpu.dynamic_rotate %66 by %c71_i32_36 dim 0 : vector<72x8xf32>, i32 -> vector<72x8xf32>
    %cst_37 = arith.constant 0.000000e+00 : f32
    %76 = vector.broadcast %cst_37 : f32 to vector<72x8xf32>
    %77 = arith.select %74, %76, %75 : vector<72x8xi1>, vector<72x8xf32>
    %c48 = arith.constant 48 : index
    %c0_38 = arith.constant 0 : index
    %78 = vector.load %arg3[%c48, %c0_38] : memref<176x16xf32, #tpu.memory_space<vmem>>, vector<8x8xf32>
    %cst_39 = arith.constant dense<0.000000e+00> : vector<72x8xf32>
    %79 = tpu.matmul %72, %78, %cst_39 {dimension_numbers = #tpu.dot_dimension_numbers<[1], [0], [0], [1], [0, 0, 1, 1], [], []>} : vector<72x8xf32>, vector<8x8xf32>, vector<72x8xf32> -> vector<72x8xf32>
    %c56 = arith.constant 56 : index
    %c0_40 = arith.constant 0 : index
    %80 = vector.load %arg3[%c56, %c0_40] : memref<176x16xf32, #tpu.memory_space<vmem>>, vector<8x8xf32>
    %cst_41 = arith.constant dense<0.000000e+00> : vector<72x8xf32>
    %81 = tpu.matmul %66, %80, %cst_41 {dimension_numbers = #tpu.dot_dimension_numbers<[1], [0], [0], [1], [0, 0, 1, 1], [], []>} : vector<72x8xf32>, vector<8x8xf32>, vector<72x8xf32> -> vector<72x8xf32>
    %82 = arith.addf %79, %81 : vector<72x8xf32>
    %c64 = arith.constant 64 : index
    %c0_42 = arith.constant 0 : index
    %83 = vector.load %arg3[%c64, %c0_42] : memref<176x16xf32, #tpu.memory_space<vmem>>, vector<8x8xf32>
    %cst_43 = arith.constant dense<0.000000e+00> : vector<72x8xf32>
    %84 = tpu.matmul %77, %83, %cst_43 {dimension_numbers = #tpu.dot_dimension_numbers<[1], [0], [0], [1], [0, 0, 1, 1], [], []>} : vector<72x8xf32>, vector<8x8xf32>, vector<72x8xf32> -> vector<72x8xf32>
    %85 = arith.addf %82, %84 : vector<72x8xf32>
    %c7 = arith.constant 7 : index
    %c0_44 = arith.constant 0 : index
    %86 = vector.load %arg2[%c7, %c0_44] : memref<24x16xf32, #tpu.memory_space<vmem>>, vector<1x8xf32>
    %87 = vector.broadcast %86 : vector<1x8xf32> to vector<72x8xf32>
    %88 = arith.addf %85, %87 : vector<72x8xf32>
    %89 = arith.addf %88, %22 : vector<72x8xf32>
    %c1_i32_45 = arith.constant 1 : i32
    %90 = tpu.dynamic_rotate %89 by %c1_i32_45 dim 0 : vector<72x8xf32>, i32 -> vector<72x8xf32>
    %91 = arith.maximumf %90, %89 : vector<72x8xf32>
    %c71_i32_46 = arith.constant 71 : i32
    %92 = tpu.dynamic_rotate %89 by %c71_i32_46 dim 0 : vector<72x8xf32>, i32 -> vector<72x8xf32>
    %93 = arith.maximumf %91, %92 : vector<72x8xf32>
    %c0_47 = arith.constant 0 : index
    %c0_48 = arith.constant 0 : index
    %94 = vector.load %arg5[%c0_47, %c0_48] : memref<216x16xf32, #tpu.memory_space<vmem>>, vector<72x8xf32>
    tpu.vector_store %arg5[%c0_47, %c0_48], %93 {strides = array<i32>} : memref<216x16xf32, #tpu.memory_space<vmem>>, vector<72x8xf32>,
    %c1_49 = arith.constant 1 : index
    %c0_50 = arith.constant 0 : index
    %95 = tpu.strided_load %arg5[%c1_49, %c0_50] {strides = array<i32: 3, 1>} : memref<216x16xf32, #tpu.memory_space<vmem>>, vector<24x16xf32>
    %96 = vector.extract_strided_slice %95 {offsets = [0, 0], sizes = [24, 8], strides = [1, 1]} : vector<24x16xf32> to vector<24x8xf32>
    %cst_51 = arith.constant dense<0.000000e+00> : vector<8xf32>
    %97 = vector.multi_reduction <add>, %96, %cst_51 [0] : vector<24x8xf32> to vector<8xf32>
    %98 = vector.shape_cast %97 : vector<8xf32> to vector<1x8xf32>
    %cst_52 = arith.constant 0.0416666679 : f32
    %99 = vector.broadcast %cst_52 : f32 to vector<1x8xf32>
    %100 = arith.mulf %98, %99 : vector<1x8xf32>
    %c72 = arith.constant 72 : index
    %c0_53 = arith.constant 0 : index
    %101 = vector.load %arg3[%c72, %c0_53] : memref<176x16xf32, #tpu.memory_space<vmem>>, vector<8x8xf32>
    %cst_54 = arith.constant dense<0.000000e+00> : vector<1x8xf32>
    %102 = tpu.matmul %100, %101, %cst_54 {dimension_numbers = #tpu.dot_dimension_numbers<[1], [0], [0], [1], [0, 0, 1, 1], [], []>} : vector<1x8xf32>, vector<8x8xf32>, vector<1x8xf32> -> vector<1x8xf32>
    %c8 = arith.constant 8 : index
    %c0_55 = arith.constant 0 : index
    %103 = vector.load %arg2[%c8, %c0_55] : memref<24x16xf32, #tpu.memory_space<vmem>>, vector<1x8xf32>
    %104 = arith.addf %102, %103 : vector<1x8xf32>
    %cst_56 = arith.constant 0.000000e+00 : f32
    %105 = vector.broadcast %cst_56 : f32 to vector<1x8xf32>
    %106 = arith.subf %105, %104 : vector<1x8xf32>
    %107 = math.exp %106 : vector<1x8xf32>
    %cst_57 = arith.constant 1.000000e+00 : f32
    %108 = vector.broadcast %cst_57 : f32 to vector<1x8xf32>
    %109 = arith.addf %108, %107 : vector<1x8xf32>
    %110 = tpu.reciprocal %109 {approx = true} : vector<1x8xf32> -> vector<1x8xf32>
    %111 = vector.broadcast %110 : vector<1x8xf32> to vector<24x8xf32>
    %112 = arith.mulf %96, %111 : vector<24x8xf32>
    %113 = vector.broadcast %110 : vector<1x8xf32> to vector<24x8xf32>
    %114 = arith.addf %112, %113 : vector<24x8xf32>
    %c9 = arith.constant 9 : index
    %c0_58 = arith.constant 0 : index
    %115 = vector.load %arg2[%c9, %c0_58] : memref<24x16xf32, #tpu.memory_space<vmem>>, vector<1x8xf32>
    %116 = vector.broadcast %115 : vector<1x8xf32> to vector<24x8xf32>
    %117 = arith.mulf %114, %116 : vector<24x8xf32>
    %c10 = arith.constant 10 : index
    %c0_59 = arith.constant 0 : index
    %118 = vector.load %arg2[%c10, %c0_59] : memref<24x16xf32, #tpu.memory_space<vmem>>, vector<1x8xf32>
    %119 = vector.broadcast %118 : vector<1x8xf32> to vector<24x8xf32>
    %120 = arith.addf %117, %119 : vector<24x8xf32>
    %cst_60 = arith.constant 0.000000e+00 : f32
    %121 = vector.broadcast %cst_60 : f32 to vector<24x8xf32>
    %122 = arith.cmpf oge, %120, %121 : vector<24x8xf32>
    %cst_61 = arith.constant 2.000000e-01 : f32
    %123 = vector.broadcast %cst_61 : f32 to vector<24x8xf32>
    %124 = arith.mulf %123, %120 : vector<24x8xf32>
    %125 = arith.select %122, %120, %124 : vector<24x8xi1>, vector<24x8xf32>
    %126 = tpu.iota {dimensions = array<i32: 0>} : vector<24x8xi32>
    %c0_i32_62 = arith.constant 0 : i32
    %127 = vector.broadcast %c0_i32_62 : i32 to vector<24x8xi32>
    %128 = arith.cmpi eq, %126, %127 : vector<24x8xi32>
    %c1_i32_63 = arith.constant 1 : i32
    %129 = tpu.dynamic_rotate %125 by %c1_i32_63 dim 0 : vector<24x8xf32>, i32 -> vector<24x8xf32>
    %cst_64 = arith.constant 0.000000e+00 : f32
    %130 = vector.broadcast %cst_64 : f32 to vector<24x8xf32>
    %131 = arith.select %128, %130, %129 : vector<24x8xi1>, vector<24x8xf32>
    %c23_i32 = arith.constant 23 : i32
    %132 = vector.broadcast %c23_i32 : i32 to vector<24x8xi32>
    %133 = arith.cmpi eq, %126, %132 : vector<24x8xi32>
    %c23_i32_65 = arith.constant 23 : i32
    %134 = tpu.dynamic_rotate %125 by %c23_i32_65 dim 0 : vector<24x8xf32>, i32 -> vector<24x8xf32>
    %cst_66 = arith.constant 0.000000e+00 : f32
    %135 = vector.broadcast %cst_66 : f32 to vector<24x8xf32>
    %136 = arith.select %133, %135, %134 : vector<24x8xi1>, vector<24x8xf32>
    %c80 = arith.constant 80 : index
    %c0_67 = arith.constant 0 : index
    %137 = vector.load %arg3[%c80, %c0_67] : memref<176x16xf32, #tpu.memory_space<vmem>>, vector<8x16xf32>
    %cst_68 = arith.constant dense<0.000000e+00> : vector<24x16xf32>
    %138 = tpu.matmul %131, %137, %cst_68 {dimension_numbers = #tpu.dot_dimension_numbers<[1], [0], [0], [1], [0, 0, 1, 1], [], []>} : vector<24x8xf32>, vector<8x16xf32>, vector<24x16xf32> -> vector<24x16xf32>
    %c88 = arith.constant 88 : index
    %c0_69 = arith.constant 0 : index
    %139 = vector.load %arg3[%c88, %c0_69] : memref<176x16xf32, #tpu.memory_space<vmem>>, vector<8x16xf32>
    %cst_70 = arith.constant dense<0.000000e+00> : vector<24x16xf32>
    %140 = tpu.matmul %125, %139, %cst_70 {dimension_numbers = #tpu.dot_dimension_numbers<[1], [0], [0], [1], [0, 0, 1, 1], [], []>} : vector<24x8xf32>, vector<8x16xf32>, vector<24x16xf32> -> vector<24x16xf32>
    %141 = arith.addf %138, %140 : vector<24x16xf32>
    %c96 = arith.constant 96 : index
    %c0_71 = arith.constant 0 : index
    %142 = vector.load %arg3[%c96, %c0_71] : memref<176x16xf32, #tpu.memory_space<vmem>>, vector<8x16xf32>
    %cst_72 = arith.constant dense<0.000000e+00> : vector<24x16xf32>
    %143 = tpu.matmul %136, %142, %cst_72 {dimension_numbers = #tpu.dot_dimension_numbers<[1], [0], [0], [1], [0, 0, 1, 1], [], []>} : vector<24x8xf32>, vector<8x16xf32>, vector<24x16xf32> -> vector<24x16xf32>
    %144 = arith.addf %141, %143 : vector<24x16xf32>
    %c11 = arith.constant 11 : index
    %c0_73 = arith.constant 0 : index
    %145 = vector.load %arg2[%c11, %c0_73] : memref<24x16xf32, #tpu.memory_space<vmem>>, vector<1x16xf32>
    %146 = vector.broadcast %145 : vector<1x16xf32> to vector<24x16xf32>
    %147 = arith.addf %144, %146 : vector<24x16xf32>
    %c12 = arith.constant 12 : index
    %c0_74 = arith.constant 0 : index
    %148 = vector.load %arg2[%c12, %c0_74] : memref<24x16xf32, #tpu.memory_space<vmem>>, vector<1x16xf32>
    %149 = vector.broadcast %148 : vector<1x16xf32> to vector<24x16xf32>
    %150 = arith.mulf %147, %149 : vector<24x16xf32>
    %c13 = arith.constant 13 : index
    %c0_75 = arith.constant 0 : index
    %151 = vector.load %arg2[%c13, %c0_75] : memref<24x16xf32, #tpu.memory_space<vmem>>, vector<1x16xf32>
    %152 = vector.broadcast %151 : vector<1x16xf32> to vector<24x16xf32>
    %153 = arith.addf %150, %152 : vector<24x16xf32>
    %cst_76 = arith.constant 0.000000e+00 : f32
    %154 = vector.broadcast %cst_76 : f32 to vector<24x16xf32>
    %155 = arith.cmpf oge, %153, %154 : vector<24x16xf32>
    %cst_77 = arith.constant 2.000000e-01 : f32
    %156 = vector.broadcast %cst_77 : f32 to vector<24x16xf32>
    %157 = arith.mulf %156, %153 : vector<24x16xf32>
    %158 = arith.select %155, %153, %157 : vector<24x16xi1>, vector<24x16xf32>
    %159 = tpu.iota {dimensions = array<i32: 0>} : vector<24x16xi32>
    %c0_i32_78 = arith.constant 0 : i32
    %160 = vector.broadcast %c0_i32_78 : i32 to vector<24x16xi32>
    %161 = arith.cmpi eq, %159, %160 : vector<24x16xi32>
    %c1_i32_79 = arith.constant 1 : i32
    %162 = tpu.dynamic_rotate %158 by %c1_i32_79 dim 0 : vector<24x16xf32>, i32 -> vector<24x16xf32>
    %cst_80 = arith.constant 0.000000e+00 : f32
    %163 = vector.broadcast %cst_80 : f32 to vector<24x16xf32>
    %164 = arith.select %161, %163, %162 : vector<24x16xi1>, vector<24x16xf32>
    %c23_i32_81 = arith.constant 23 : i32
    %165 = vector.broadcast %c23_i32_81 : i32 to vector<24x16xi32>
    %166 = arith.cmpi eq, %159, %165 : vector<24x16xi32>
    %c23_i32_82 = arith.constant 23 : i32
    %167 = tpu.dynamic_rotate %158 by %c23_i32_82 dim 0 : vector<24x16xf32>, i32 -> vector<24x16xf32>
    %cst_83 = arith.constant 0.000000e+00 : f32
    %168 = vector.broadcast %cst_83 : f32 to vector<24x16xf32>
    %169 = arith.select %166, %168, %167 : vector<24x16xi1>, vector<24x16xf32>
    %c104 = arith.constant 104 : index
    %c0_84 = arith.constant 0 : index
    %170 = vector.load %arg3[%c104, %c0_84] : memref<176x16xf32, #tpu.memory_space<vmem>>, vector<16x16xf32>
    %cst_85 = arith.constant dense<0.000000e+00> : vector<24x16xf32>
    %171 = tpu.matmul %164, %170, %cst_85 {dimension_numbers = #tpu.dot_dimension_numbers<[1], [0], [0], [1], [0, 0, 1, 1], [], []>} : vector<24x16xf32>, vector<16x16xf32>, vector<24x16xf32> -> vector<24x16xf32>
    %c120 = arith.constant 120 : index
    %c0_86 = arith.constant 0 : index
    %172 = vector.load %arg3[%c120, %c0_86] : memref<176x16xf32, #tpu.memory_space<vmem>>, vector<16x16xf32>
    %cst_87 = arith.constant dense<0.000000e+00> : vector<24x16xf32>
    %173 = tpu.matmul %158, %172, %cst_87 {dimension_numbers = #tpu.dot_dimension_numbers<[1], [0], [0], [1], [0, 0, 1, 1], [], []>} : vector<24x16xf32>, vector<16x16xf32>, vector<24x16xf32> -> vector<24x16xf32>
    %174 = arith.addf %171, %173 : vector<24x16xf32>
    %c136 = arith.constant 136 : index
    %c0_88 = arith.constant 0 : index
    %175 = vector.load %arg3[%c136, %c0_88] : memref<176x16xf32, #tpu.memory_space<vmem>>, vector<16x16xf32>
    %cst_89 = arith.constant dense<0.000000e+00> : vector<24x16xf32>
    %176 = tpu.matmul %169, %175, %cst_89 {dimension_numbers = #tpu.dot_dimension_numbers<[1], [0], [0], [1], [0, 0, 1, 1], [], []>} : vector<24x16xf32>, vector<16x16xf32>, vector<24x16xf32> -> vector<24x16xf32>
    %177 = arith.addf %174, %176 : vector<24x16xf32>
    %c14 = arith.constant 14 : index
    %c0_90 = arith.constant 0 : index
    %178 = vector.load %arg2[%c14, %c0_90] : memref<24x16xf32, #tpu.memory_space<vmem>>, vector<1x16xf32>
    %179 = vector.broadcast %178 : vector<1x16xf32> to vector<24x16xf32>
    %180 = arith.addf %177, %179 : vector<24x16xf32>
    %c152 = arith.constant 152 : index
    %c0_91 = arith.constant 0 : index
    %181 = vector.load %arg3[%c152, %c0_91] : memref<176x16xf32, #tpu.memory_space<vmem>>, vector<8x16xf32>
    %cst_92 = arith.constant dense<0.000000e+00> : vector<24x16xf32>
    %182 = tpu.matmul %114, %181, %cst_92 {dimension_numbers = #tpu.dot_dimension_numbers<[1], [0], [0], [1], [0, 0, 1, 1], [], []>} : vector<24x8xf32>, vector<8x16xf32>, vector<24x16xf32> -> vector<24x16xf32>
    %c15 = arith.constant 15 : index
    %c0_93 = arith.constant 0 : index
    %183 = vector.load %arg2[%c15, %c0_93] : memref<24x16xf32, #tpu.memory_space<vmem>>, vector<1x16xf32>
    %184 = vector.broadcast %183 : vector<1x16xf32> to vector<24x16xf32>
    %185 = arith.addf %182, %184 : vector<24x16xf32>
    %186 = arith.addf %180, %185 : vector<24x16xf32>
    %c1_i32_94 = arith.constant 1 : i32
    %187 = tpu.dynamic_rotate %186 by %c1_i32_94 dim 0 : vector<24x16xf32>, i32 -> vector<24x16xf32>
    %188 = arith.maximumf %187, %186 : vector<24x16xf32>
    %c23_i32_95 = arith.constant 23 : i32
    %189 = tpu.dynamic_rotate %186 by %c23_i32_95 dim 0 : vector<24x16xf32>, i32 -> vector<24x16xf32>
    %190 = arith.maximumf %188, %189 : vector<24x16xf32>
    %c0_96 = arith.constant 0 : index
    %c0_97 = arith.constant 0 : index
    %191 = vector.load %arg5[%c0_96, %c0_97] : memref<216x16xf32, #tpu.memory_space<vmem>>, vector<24x16xf32>
    tpu.vector_store %arg5[%c0_96, %c0_97], %190 {strides = array<i32>} : memref<216x16xf32, #tpu.memory_space<vmem>>, vector<24x16xf32>,
    %c1_98 = arith.constant 1 : index
    %c0_99 = arith.constant 0 : index
    %192 = tpu.strided_load %arg5[%c1_98, %c0_99] {strides = array<i32: 3, 1>} : memref<216x16xf32, #tpu.memory_space<vmem>>, vector<8x16xf32>
    %cst_100 = arith.constant dense<0.000000e+00> : vector<16xf32>
    %193 = vector.multi_reduction <add>, %192, %cst_100 [0] : vector<8x16xf32> to vector<16xf32>
    %194 = vector.shape_cast %193 : vector<16xf32> to vector<1x16xf32>
    %cst_101 = arith.constant 1.250000e-01 : f32
    %195 = vector.broadcast %cst_101 : f32 to vector<1x16xf32>
    %196 = arith.mulf %194, %195 : vector<1x16xf32>
    %c160 = arith.constant 160 : index
    %c0_102 = arith.constant 0 : index
    %197 = vector.load %arg3[%c160, %c0_102] : memref<176x16xf32, #tpu.memory_space<vmem>>, vector<16x16xf32>
    %cst_103 = arith.constant dense<0.000000e+00> : vector<1x16xf32>
    %198 = tpu.matmul %196, %197, %cst_103 {dimension_numbers = #tpu.dot_dimension_numbers<[1], [0], [0], [1], [0, 0, 1, 1], [], []>} : vector<1x16xf32>, vector<16x16xf32>, vector<1x16xf32> -> vector<1x16xf32>
    %c16 = arith.constant 16 : index
    %c0_104 = arith.constant 0 : index
    %199 = vector.load %arg2[%c16, %c0_104] : memref<24x16xf32, #tpu.memory_space<vmem>>, vector<1x16xf32>
    %200 = arith.addf %198, %199 : vector<1x16xf32>
    %cst_105 = arith.constant 0.000000e+00 : f32
    %201 = vector.broadcast %cst_105 : f32 to vector<1x16xf32>
    %202 = arith.subf %201, %200 : vector<1x16xf32>
    %203 = math.exp %202 : vector<1x16xf32>
    %cst_106 = arith.constant 1.000000e+00 : f32
    %204 = vector.broadcast %cst_106 : f32 to vector<1x16xf32>
    %205 = arith.addf %204, %203 : vector<1x16xf32>
    %206 = tpu.reciprocal %205 {approx = true} : vector<1x16xf32> -> vector<1x16xf32>
    %207 = vector.broadcast %206 : vector<1x16xf32> to vector<8x16xf32>
    %208 = arith.mulf %192, %207 : vector<8x16xf32>
    %209 = vector.broadcast %206 : vector<1x16xf32> to vector<8x16xf32>
    %210 = arith.addf %208, %209 : vector<8x16xf32>
    %c0_107 = arith.constant 0 : index
    %c0_108 = arith.constant 0 : index
    %c0_109 = arith.constant 0 : index
    %211 = vector.load %arg4[%c0_107, %c0_108, %c0_109] : memref<1x8x16xf32, #tpu.memory_space<vmem>>, vector<1x8x16xf32>
    %212 = vector.shape_cast %211 : vector<1x8x16xf32> to vector<8x16xf32>
    %213 = vector.shape_cast %210 : vector<8x16xf32> to vector<1x8x16xf32>
    tpu.vector_store %arg4[%c0_107, %c0_108, %c0_109], %213 {strides = array<i32>} : memref<1x8x16xf32, #tpu.memory_space<vmem>>, vector<1x8x16xf32>,
    return
  }
  func.func @transform_0(%arg0: i32) -> (i32, i32, i32) {
    %c0_i32 = arith.constant 0 : i32
    %c0_i32_0 = arith.constant 0 : i32
    %c0_i32_1 = arith.constant 0 : i32
    return %arg0, %c0_i32, %c0_i32_0 : i32, i32, i32
  }
  func.func @transform_1(%arg0: i32) -> (i32, i32) {
    %c0_i32 = arith.constant 0 : i32
    %c0_i32_0 = arith.constant 0 : i32
    %c0_i32_1 = arith.constant 0 : i32
    return %c0_i32, %c0_i32_0 : i32, i32
  }
  func.func @transform_2(%arg0: i32) -> (i32, i32) {
    %c0_i32 = arith.constant 0 : i32
    %c0_i32_0 = arith.constant 0 : i32
    %c0_i32_1 = arith.constant 0 : i32
    return %c0_i32, %c0_i32_0 : i32, i32
  }
  func.func @transform_3(%arg0: i32) -> (i32, i32, i32) {
    %c0_i32 = arith.constant 0 : i32
    %c0_i32_0 = arith.constant 0 : i32
    %c0_i32_1 = arith.constant 0 : i32
    return %arg0, %c0_i32, %c0_i32_0 : i32, i32, i32
  }
}

</mosaic_0001>

<bundles_post_ra>
// kernel: tpu_custom_call.1
= control target key start
LH: loop header
LB: loop body
LE: loop exit
PB: predicated region body
PF: predicated region fallthrough
CT: control target
= control target key end

     0   :  { %8 = vsyncpa [#allocation4], 0  ;;  %s4975_s0 = inlined_call_operand.vmem [shape: f32[2,216,17], index: 0, kind: input, shape index: {}]   ;;  %s4976_s1 = inlined_call_operand.vmem [shape: f32[24,16], index: 1, kind: input, shape index: {}]   ;;  %s4977_s2 = inlined_call_operand.vmem [shape: f32[176,16], index: 2, kind: input, shape index: {}]   ;;  %s4978_s3 = inlined_call_operand.hbm [shape: f32[2,8,16], index: 3, kind: output, shape index: {}]  }
   0x1   :  { %10 = vsyncpa [#allocation4 + $0x1], 0  ;;  %s3765_s12 = smov 0   ;;  %s3767_s13 = smov 0  }
   0x2   :  { %s3769_s14 = smov 0   ;;  %s3771_s15 = smov 0  }
   0x3 LB: > { %s3786_s16 = sadd.s32 4294967295, %s3740_s15   ;;  %s3018_s17 = sadd.s32 4294967294, %s3740_s15   ;;  %s3740_s15 = sphi %s3771_s15, %s4984_s15   ;;  %s3736_s14 = sphi %s3769_s14, %s4983_s14   ;;  %s3732_s13 = sphi %s3767_s13, %s4982_s13   ;;  %s3728_s12 = sphi %s3765_s12, %s4981_s12  }
   0x4   : > { %s3790_s18 = sadd.s32 1, %s3740_s15   ;;  %s91_s19 = sadd.s32 1, %s3736_s14 }
   0x5   : > { %s88_s20 = ssub.s32 %s3740_s15, %s3790_s18  ;;  %p101_p0 = scmp.ne.s32.totalorder %s3736_s14, %s3732_s13 }
   0x6   : > { %p89_p1 = scmp.eq.s32.totalorder %s88_s20, 0  ;;  %p102_p2 = scmp.eq.s32.totalorder %s3786_s16, 1 }
   0x7   : > { %p107_p3 = scmp.ne.s32.totalorder %s3732_s13, %s3728_s12  ;;  %p108_p4 = scmp.eq.s32.totalorder %s3018_s17, 1 }
   0x8   : > { %s3801_s21 = scalar_select %p89_p1, %s3736_s14, %s91_s19  }
   0x9   : > { %p3803_p5 = por %p102_p2, %p101_p0  ;;  %p3807_p6 = por %p108_p4, %p107_p3 }
   0xa   : > { %p3021_p7 = scmp.ge.s32.totalorder %s3740_s15, 1  ;;  %p140_p8 = scmp.lt.s32.totalorder %s3740_s15, 3 }
   0xc   : > { %p141_p9 = pnand %p3021_p7, %p140_p8 }
   0xd   : > { %p164_p10 = scmp.lt.s32.totalorder (!%p141_p9), %s3786_s16, 1  ;;  %s161_s8 = sand.u32 (!%p141_p9), 1, %s3732_s13  }
   0xe   : > { %144 = sbr.rel (%p141_p9) target bundleno = 1910 (0x776), region = 32  ;;  %s3022_s9 = sshll.u32 (!%p141_p9), %s161_s8, 3 }
   0xf   : > { %s3145_s10 = sshll.u32 (!%p141_p9), %s3786_s16, 7  ;;  %s163_s11 = scalar_lea.vmem (!%p141_p9), [#allocation3], %s3022_s9 }
  0x10   : > { %s2959_s17 = sshll.u32 (!%p141_p9), %s163_s11, 4  ;;  %s2957_s24 = scalar_lea.hbm (!%p141_p9), %s4978_s3, %s3145_s10  ;;  %s2960_s17 = int_to_ptr.vmem [resolvable:$true] %s2959_s17 }
  0x11   : > { %s2946_s25 = scalar_lea.sflag (!%p141_p9), [#allocation4], %s161_s8  ;;  %s3680_s26 = scalar_lea.vmem (!%p141_p9), %s2960_s17, 128 }
  0x12   : > { %p3681_p11 = scmp.ne.s32.totalorder (!%p141_p9), %s2960_s17, %s3680_s26  ;;  %s3744_s27 = smov (!%p141_p9), [#allocation3]  }
  0x13   : > { %v198_v0 = vld [vmem:[%s4977_s2 + $0x10] sm:$0x1]  ;;  %vm281_vm0 = vcmask 1040384   ;;  %v3742_v1 = vmov 0.0   ;;  %v197_v2 = vld [vmem:[%s4977_s2 + $0x8] sm:$0xff]  ;;  %vm3743_vm1 = vmmov 0   ;;  %v539_v32 = vlaneseq }
  0x14   : > { %3274 = vmatprep.subr.mxu0 %v3742_v1  ;;  %3361 = vmatprep.subr.mxu1 %v3742_v1  ;;  %v196_v3 = vld [vmem:[%s4977_s2] sm:$0xff]  ;;  %s165_s30 = scalar_select %p164_p10, %s3786_s16, 1  ;;  %vm199_vm2 = vcmask 138240   ;;  %vm678_vm5 = vcmask 64512  }
  0x15   : > { %3275 = vmatpush3.msk.msra.mxu0 %vm281_vm0, %v198_v0  ;;  %3280 = vmatprep.mubr.msk.f32.mxu0 %vm3743_vm1, %v3742_v1  ;;  %v915_v31 = vld [vmem:[%s4977_s2 + $0x20] sm:$0xff]  ;;  %v3950_v35 = vshrl.u32 %v539_v32, 7  ;;  %p3682_p12 = pnand %p3681_p11, %p3803_p5  ;;  %s3684_s28 = sshll.u32 %s3744_s27, 4  ;;  %s3685_s28 = int_to_ptr.vmem [resolvable:$false] %s3684_s28 }
  0x16   : > { %3276 = vmatprep.subr.mxu0 %v3742_v1  ;;  %3363 = vmatprep.mubr.msk.f32.mxu1 %vm3743_vm1, %v3742_v1  ;;  %s3630_s4 = smul.u32 216, %s165_s30  ;;  %s3686_s16 = scalar_lea.vmem %s3685_s28, 256 }
  0x17   : > { %3277 = vmatpush3.msra.mxu0 %v197_v2  ;;  %3362 = vmatpush3.msra.mxu1 %v915_v31  ;;  %vm541_vm3 = vcmp.lt.s32.totalorder %v3950_v35, 1  ;;  %vm623_vm4 = vcmp.lt.s32.totalorder %v3950_v35, 7  ;;  %p3683_p13 = pneg %p3682_p12  ;;  %p3687_p0 = scmp.lt.s32.totalorder %s2960_s17, %s3685_s28 }
  0x18   : > { %3278 = vmatprep.subr.mxu0 %v3742_v1  ;;  %s3835_s7 = scalar_lea.vmem %s4975_s0, %s3630_s4  ;;  %3390 = vmatprep.subr.mxu1 %v3742_v1  ;;  %p3688_p1 = scmp.lt.s32.totalorder %s3686_s16, %s3680_s26 }
  0x19   : > { %3279 = vmatpush3.msra.mxu0 %v196_v3  ;;  %v169_v4 = vld [vmem:[%s3835_s7] sm:$0xff]  ;;  %v170_v5 = vld [vmem:[%s3835_s7 + $0x8] sm:$0xff]  ;;  %v171_v6 = vld [vmem:[%s3835_s7 + $0x10] sm:$0xff] }
  0x1a   : > { %3477 = vmatprep.subr.mxu0 %v3742_v1  ;;  %3281 = vmatmul.mubr.msk.f32.vlgmr.msra.gmra.mxu0 %vm199_vm2, %v169_v4  ;;  %v172_v7 = vld [vmem:[%s3835_s7 + $0x18] sm:$0xff]  ;;  %v173_v8 = vld [vmem:[%s3835_s7 + $0x20] sm:$0xff]  ;;  %v174_v9 = vld [vmem:[%s3835_s7 + $0x28] sm:$0xff]  ;;  %p3689_p2 = por %p3688_p1, %p3687_p0 }
  0x1b   : > { %3283 = vmatprep.mubr.msk.f32.mxu0 %vm3743_vm1, %v3742_v1  ;;  %v175_v10 = vld [vmem:[%s3835_s7 + $0x30] sm:$0xff]  ;;  %v176_v11 = vld [vmem:[%s3835_s7 + $0x38] sm:$0xff]  ;;  %v177_v12 = vld [vmem:[%s3835_s7 + $0x40] sm:$0xff] }
  0x1c   : > { %v178_v13 = vld [vmem:[%s3835_s7 + $0x48] sm:$0xff]  ;;  %v179_v14 = vld [vmem:[%s3835_s7 + $0x50] sm:$0xff]  ;;  %v180_v15 = vld [vmem:[%s3835_s7 + $0x58] sm:$0xff]  ;;  %p3690_p3 = pnand %p3689_p2, %p3683_p13 }
  0x1d   : > { %v181_v16 = vld [vmem:[%s3835_s7 + $0x60] sm:$0xff]  ;;  %v182_v17 = vld [vmem:[%s3835_s7 + $0x68] sm:$0xff]  ;;  %v183_v18 = vld [vmem:[%s3835_s7 + $0x70] sm:$0xff] }
  0x1e   : > { %3284 = vmatmul.mubr.msk.f32.gmra.mxu0 %vm199_vm2, %v170_v5  ;;  %v184_v19 = vld [vmem:[%s3835_s7 + $0x78] sm:$0xff]  ;;  %v185_v20 = vld [vmem:[%s3835_s7 + $0x80] sm:$0xff]  ;;  %v186_v21 = vld [vmem:[%s3835_s7 + $0x88] sm:$0xff] }
  0x1f   : > { %3286 = vmatprep.mubr.msk.f32.mxu0 %vm3743_vm1, %v3742_v1  ;;  %v187_v22 = vld [vmem:[%s3835_s7 + $0x90] sm:$0xff]  ;;  %v188_v23 = vld [vmem:[%s3835_s7 + $0x98] sm:$0xff]  ;;  %v189_v24 = vld [vmem:[%s3835_s7 + $0xa0] sm:$0xff] }
  0x20   : > { %v190_v25 = vld [vmem:[%s3835_s7 + $0xa8] sm:$0xff]  ;;  %v191_v26 = vld [vmem:[%s3835_s7 + $0xb0] sm:$0xff]  ;;  %v192_v27 = vld [vmem:[%s3835_s7 + $0xb8] sm:$0xff] }
  0x21   : > { %v193_v28 = vld [vmem:[%s3835_s7 + $0xc0] sm:$0xff]  ;;  %v194_v29 = vld [vmem:[%s3835_s7 + $0xc8] sm:$0xff]  ;;  %v195_v30 = vld [vmem:[%s3835_s7 + $0xd0] sm:$0xff] }
  0x22   : > { %3287 = vmatmul.mubr.msk.f32.gmra.mxu0 %vm199_vm2, %v171_v6 }
  0x23   : > { %3289 = vmatprep.mubr.msk.f32.mxu0 %vm3743_vm1, %v3742_v1 }
  0x26   : > { %3290 = vmatmul.mubr.msk.f32.gmra.mxu0 %vm199_vm2, %v172_v7 }
  0x27   : > { %3292 = vmatprep.mubr.msk.f32.mxu0 %vm3743_vm1, %v3742_v1 }
  0x2a   : > { %3293 = vmatmul.mubr.msk.f32.gmra.mxu0 %vm199_vm2, %v173_v8 }
  0x2b   : > { %3295 = vmatprep.mubr.msk.f32.mxu0 %vm3743_vm1, %v3742_v1 }
  0x2e   : > { %3296 = vmatmul.mubr.msk.f32.gmra.mxu0 %vm199_vm2, %v174_v9 }
  0x2f   : > { %3298 = vmatprep.mubr.msk.f32.mxu0 %vm3743_vm1, %v3742_v1 }
  0x32   : > { %3299 = vmatmul.mubr.msk.f32.gmra.mxu0 %vm199_vm2, %v175_v10 }
  0x33   : > { %3301 = vmatprep.mubr.msk.f32.mxu0 %vm3743_vm1, %v3742_v1 }
  0x36   : > { %3302 = vmatmul.mubr.msk.f32.gmra.mxu0 %vm199_vm2, %v176_v11 }
  0x37   : > { %3304 = vmatprep.mubr.msk.f32.mxu0 %vm3743_vm1, %v3742_v1 }
  0x3a   : > { %3305 = vmatmul.mubr.msk.f32.gmra.mxu0 %vm199_vm2, %v177_v12 }
  0x3b   : > { %3307 = vmatprep.mubr.msk.f32.mxu0 %vm3743_vm1, %v3742_v1 }
  0x3e   : > { %3308 = vmatmul.mubr.msk.f32.gmra.mxu0 %vm199_vm2, %v178_v13 }
  0x3f   : > { %3310 = vmatprep.mubr.msk.f32.mxu0 %vm3743_vm1, %v3742_v1 }
  0x42   : > { %3311 = vmatmul.mubr.msk.f32.gmra.mxu0 %vm199_vm2, %v179_v14 }
  0x43   : > { %3313 = vmatprep.mubr.msk.f32.mxu0 %vm3743_vm1, %v3742_v1 }
  0x46   : > { %3314 = vmatmul.mubr.msk.f32.gmra.mxu0 %vm199_vm2, %v180_v15 }
  0x47   : > { %3316 = vmatprep.mubr.msk.f32.mxu0 %vm3743_vm1, %v3742_v1 }
  0x4a   : > { %3317 = vmatmul.mubr.msk.f32.gmra.mxu0 %vm199_vm2, %v181_v16 }
  0x4b   : > { %3319 = vmatprep.mubr.msk.f32.mxu0 %vm3743_vm1, %v3742_v1 }
  0x4e   : > { %3320 = vmatmul.mubr.msk.f32.gmra.mxu0 %vm199_vm2, %v182_v17 }
  0x4f   : > { %3322 = vmatprep.mubr.msk.f32.mxu0 %vm3743_vm1, %v3742_v1 }
  0x52   : > { %3323 = vmatmul.mubr.msk.f32.gmra.mxu0 %vm199_vm2, %v183_v18 }
  0x53   : > { %3325 = vmatprep.mubr.msk.f32.mxu0 %vm3743_vm1, %v3742_v1 }
  0x56   : > { %3326 = vmatmul.mubr.msk.f32.gmra.mxu0 %vm199_vm2, %v184_v19 }
  0x57   : > { %3328 = vmatprep.mubr.msk.f32.mxu0 %vm3743_vm1, %v3742_v1 }
  0x5a   : > { %3329 = vmatmul.mubr.msk.f32.gmra.mxu0 %vm199_vm2, %v185_v20 }
  0x5b   : > { %3331 = vmatprep.mubr.msk.f32.mxu0 %vm3743_vm1, %v3742_v1 }
  0x5e   : > { %3332 = vmatmul.mubr.msk.f32.gmra.mxu0 %vm199_vm2, %v186_v21 }
  0x5f   : > { %3334 = vmatprep.mubr.msk.f32.mxu0 %vm3743_vm1, %v3742_v1 }
  0x62   : > { %3335 = vmatmul.mubr.msk.f32.gmra.mxu0 %vm199_vm2, %v187_v22 }
  0x63   : > { %3337 = vmatprep.mubr.msk.f32.mxu0 %vm3743_vm1, %v3742_v1 }
  0x66   : > { %3338 = vmatmul.mubr.msk.f32.gmra.mxu0 %vm199_vm2, %v188_v23 }
  0x67   : > { %3340 = vmatprep.mubr.msk.f32.mxu0 %vm3743_vm1, %v3742_v1 }
  0x6a   : > { %3341 = vmatmul.mubr.msk.f32.gmra.mxu0 %vm199_vm2, %v189_v24 }
  0x6b   : > { %3343 = vmatprep.mubr.msk.f32.mxu0 %vm3743_vm1, %v3742_v1 }
  0x6e   : > { %3344 = vmatmul.mubr.msk.f32.gmra.mxu0 %vm199_vm2, %v190_v25 }
  0x6f   : > { %3346 = vmatprep.mubr.msk.f32.mxu0 %vm3743_vm1, %v3742_v1 }
  0x72   : > { %3347 = vmatmul.mubr.msk.f32.gmra.mxu0 %vm199_vm2, %v191_v26 }
  0x73   : > { %3349 = vmatprep.mubr.msk.f32.mxu0 %vm3743_vm1, %v3742_v1 }
  0x76   : > { %3350 = vmatmul.mubr.msk.f32.gmra.mxu0 %vm199_vm2, %v192_v27 }
  0x77   : > { %3352 = vmatprep.mubr.msk.f32.mxu0 %vm3743_vm1, %v3742_v1 }
  0x7a   : > { %3353 = vmatmul.mubr.msk.f32.gmra.mxu0 %vm199_vm2, %v193_v28 }
  0x7b   : > { %3355 = vmatprep.mubr.msk.f32.mxu0 %vm3743_vm1, %v3742_v1 }
  0x7e   : > { %3356 = vmatmul.mubr.msk.f32.gmra.mxu0 %vm199_vm2, %v194_v29 }
  0x7f   : > { %3358 = vmatprep.mubr.msk.f32.mxu0 %vm3743_vm1, %v3742_v1 }
  0x82   : > { %3359 = vmatmul.mubr.msk.f32.gmra.mxu0 %vm199_vm2, %v195_v30 }
  0x83   : > { %3479 = vmatprep.mubr.msk.f32.mxu0 %vm3743_vm1, %v3742_v1 }
  0xda   : > { %v351_v33 = vpop.f32.mrf.mxu0 }
  0xdb   : > { %v3952_v36 = vand.u32 2147483647, %v351_v33 }
  0xdc   : > { %v3282_v34 = vpop.f32.mrf.mxu0 }
  0xdd   : > { %v512_v40 = vrot.slane %v3952_v36, 7 }
  0xde   : > { %v356_v37 = vpop.f32.mrf.mxu0 }
  0xdf   : > { %v3954_v38 = vand.u32 2147483647, %v356_v37 }
  0xe0   : > { %v3285_v39 = vpop.f32.mrf.mxu0 }
  0xe1   : > { %v513_v41 = vrot.slane %v3954_v38, 7  ;;  %v597_v46 = vrot.slane %v3954_v38, 1 }
  0xe2   : > { %v361_v42 = vpop.f32.mrf.mxu0 }
  0xe3   : > { %v567_v43 = vsel %vm541_vm3, %v512_v40, %v513_v41  ;;  %v487_v44 = vand.u32 2147483647, %v361_v42 }
  0xe4   : > { %v3288_v45 = vpop.f32.mrf.mxu0  ;;  %v570_v49 = vmax.f32 %v567_v43, %v3954_v38 }
  0xe5   : > { %v514_v47 = vrot.slane %v487_v44, 7  ;;  %v598_v48 = vrot.slane %v487_v44, 1 }
  0xe6   : > { %v366_v50 = vpop.f32.mrf.mxu0 }
  0xe7   : > { %v566_v51 = vsel %vm541_vm3, %v513_v41, %v514_v47  ;;  %v648_v52 = vsel %vm623_vm4, %v597_v46, %v598_v48  ;;  %v488_v53 = vand.u32 2147483647, %v366_v50 }
  0xe8   : > { %v652_v54 = vmax.f32 %v570_v49, %v648_v52  ;;  %v3291_v55 = vpop.f32.mrf.mxu0  ;;  %v571_v58 = vmax.f32 %v566_v51, %v487_v44 }
  0xe9   : > { %v515_v56 = vrot.slane %v488_v53, 7  ;;  %v599_v57 = vrot.slane %v488_v53, 1 }
  0xea   : > { %680 = vst.msk [vmem:[#allocation2 + $0x8] sm:$0xff] %vm678_vm5, %v652_v54  ;;  %v371_v59 = vpop.f32.mrf.mxu0 }
  0xeb   : > { %v565_v60 = vsel %vm541_vm3, %v514_v47, %v515_v56  ;;  %v647_v61 = vsel %vm623_vm4, %v598_v48, %v599_v57  ;;  %v489_v62 = vand.u32 2147483647, %v371_v59 }
  0xec   : > { %v653_v63 = vmax.f32 %v571_v58, %v647_v61  ;;  %v3294_v0 = vpop.f32.mrf.mxu0  ;;  %v572_v4 = vmax.f32 %v565_v60, %v488_v53 }
  0xed   : > { %v516_v2 = vrot.slane %v489_v62, 7  ;;  %v600_v3 = vrot.slane %v489_v62, 1 }
  0xee   : > { %681 = vst.msk [vmem:[#allocation2 + $0x10] sm:$0xff] %vm678_vm5, %v653_v63  ;;  %v376_v5 = vpop.f32.mrf.mxu0 }
  0xef   : > { %v564_v6 = vsel %vm541_vm3, %v515_v56, %v516_v2  ;;  %v646_v7 = vsel %vm623_vm4, %v599_v57, %v600_v3  ;;  %v490_v8 = vand.u32 2147483647, %v376_v5 }
  0xf0   : > { %v654_v9 = vmax.f32 %v572_v4, %v646_v7  ;;  %v3297_v10 = vpop.f32.mrf.mxu0  ;;  %v573_v13 = vmax.f32 %v564_v6, %v489_v62 }
  0xf1   : > { %v517_v11 = vrot.slane %v490_v8, 7  ;;  %v601_v12 = vrot.slane %v490_v8, 1 }
  0xf2   : > { %682 = vst.msk [vmem:[#allocation2 + $0x18] sm:$0xff] %vm678_vm5, %v654_v9  ;;  %v381_v14 = vpop.f32.mrf.mxu0 }
  0xf3   : > { %v563_v15 = vsel %vm541_vm3, %v516_v2, %v517_v11  ;;  %v645_v16 = vsel %vm623_vm4, %v600_v3, %v601_v12  ;;  %v491_v17 = vand.u32 2147483647, %v381_v14 }
  0xf4   : > { %v655_v18 = vmax.f32 %v573_v13, %v645_v16  ;;  %v3300_v19 = vpop.f32.mrf.mxu0  ;;  %v574_v22 = vmax.f32 %v563_v15, %v490_v8 }
  0xf5   : > { %v518_v20 = vrot.slane %v491_v17, 7  ;;  %v602_v21 = vrot.slane %v491_v17, 1 }
  0xf6   : > { %683 = vst.msk [vmem:[#allocation2 + $0x20] sm:$0xff] %vm678_vm5, %v655_v18  ;;  %v386_v23 = vpop.f32.mrf.mxu0 }
  0xf7   : > { %v562_v24 = vsel %vm541_vm3, %v517_v11, %v518_v20  ;;  %v644_v25 = vsel %vm623_vm4, %v601_v12, %v602_v21  ;;  %v492_v26 = vand.u32 2147483647, %v386_v23 }
  0xf8   : > { %v656_v27 = vmax.f32 %v574_v22, %v644_v25  ;;  %v3303_v28 = vpop.f32.mrf.mxu0  ;;  %v575_v31 = vmax.f32 %v562_v24, %v491_v17 }
  0xf9   : > { %v519_v29 = vrot.slane %v492_v26, 7  ;;  %v603_v30 = vrot.slane %v492_v26, 1 }
  0xfa   : > { %684 = vst.msk [vmem:[#allocation2 + $0x28] sm:$0xff] %vm678_vm5, %v656_v27  ;;  %v391_v32 = vpop.f32.mrf.mxu0 }
  0xfb   : > { %v561_v33 = vsel %vm541_vm3, %v518_v20, %v519_v29  ;;  %v643_v34 = vsel %vm623_vm4, %v602_v21, %v603_v30  ;;  %v493_v37 = vand.u32 2147483647, %v391_v32 }
  0xfc   : > { %v657_v39 = vmax.f32 %v575_v31, %v643_v34  ;;  %v3306_v41 = vpop.f32.mrf.mxu0  ;;  %v576_v44 = vmax.f32 %v561_v33, %v492_v26 }
  0xfd   : > { %v520_v42 = vrot.slane %v493_v37, 7  ;;  %v604_v43 = vrot.slane %v493_v37, 1 }
  0xfe   : > { %685 = vst.msk [vmem:[#allocation2 + $0x30] sm:$0xff] %vm678_vm5, %v657_v39  ;;  %v396_v45 = vpop.f32.mrf.mxu0 }
  0xff   : > { %v560_v47 = vsel %vm541_vm3, %v519_v29, %v520_v42  ;;  %v642_v48 = vsel %vm623_vm4, %v603_v30, %v604_v43  ;;  %v494_v49 = vand.u32 2147483647, %v396_v45 }
 0x100   : > { %v658_v50 = vmax.f32 %v576_v44, %v642_v48  ;;  %v3309_v51 = vpop.f32.mrf.mxu0  ;;  %v577_v54 = vmax.f32 %v560_v47, %v493_v37 }
 0x101   : > { %v521_v52 = vrot.slane %v494_v49, 7  ;;  %v605_v53 = vrot.slane %v494_v49, 1 }
 0x102   : > { %686 = vst.msk [vmem:[#allocation2 + $0x38] sm:$0xff] %vm678_vm5, %v658_v50  ;;  %v401_v55 = vpop.f32.mrf.mxu0 }
 0x103   : > { %v559_v56 = vsel %vm541_vm3, %v520_v42, %v521_v52  ;;  %v641_v57 = vsel %vm623_vm4, %v604_v43, %v605_v53  ;;  %v495_v58 = vand.u32 2147483647, %v401_v55 }
 0x104   : > { %v659_v59 = vmax.f32 %v577_v54, %v641_v57  ;;  %v3312_v60 = vpop.f32.mrf.mxu0  ;;  %v578_v63 = vmax.f32 %v559_v56, %v494_v49 }
 0x105   : > { %v522_v61 = vrot.slane %v495_v58, 7  ;;  %v606_v62 = vrot.slane %v495_v58, 1 }
 0x106   : > { %687 = vst.msk [vmem:[#allocation2 + $0x40] sm:$0xff] %vm678_vm5, %v659_v59  ;;  %v406_v0 = vpop.f32.mrf.mxu0 }
 0x107   : > { %v558_v2 = vsel %vm541_vm3, %v521_v52, %v522_v61  ;;  %v640_v3 = vsel %vm623_vm4, %v605_v53, %v606_v62  ;;  %v496_v4 = vand.u32 2147483647, %v406_v0 }
 0x108   : > { %v660_v5 = vmax.f32 %v578_v63, %v640_v3  ;;  %v3315_v6 = vpop.f32.mrf.mxu0  ;;  %v579_v9 = vmax.f32 %v558_v2, %v495_v58 }
 0x109   : > { %v523_v7 = vrot.slane %v496_v4, 7  ;;  %v607_v8 = vrot.slane %v496_v4, 1 }
 0x10a   : > { %688 = vst.msk [vmem:[#allocation2 + $0x48] sm:$0xff] %vm678_vm5, %v660_v5  ;;  %v411_v10 = vpop.f32.mrf.mxu0 }
 0x10b   : > { %v557_v11 = vsel %vm541_vm3, %v522_v61, %v523_v7  ;;  %v639_v12 = vsel %vm623_vm4, %v606_v62, %v607_v8  ;;  %v497_v13 = vand.u32 2147483647, %v411_v10 }
 0x10c   : > { %v661_v14 = vmax.f32 %v579_v9, %v639_v12  ;;  %v3318_v15 = vpop.f32.mrf.mxu0  ;;  %v580_v18 = vmax.f32 %v557_v11, %v496_v4 }
 0x10d   : > { %v524_v16 = vrot.slane %v497_v13, 7  ;;  %v608_v17 = vrot.slane %v497_v13, 1 }
 0x10e   : > { %689 = vst.msk [vmem:[#allocation2 + $0x50] sm:$0xff] %vm678_vm5, %v661_v14  ;;  %v416_v19 = vpop.f32.mrf.mxu0  ;;  %v4050_v14 = vld [vmem:[%s4976_s1] ss:$0 sm:$0xff] }
 0x10f   : > { %v556_v20 = vsel %vm541_vm3, %v523_v7, %v524_v16  ;;  %v638_v21 = vsel %vm623_vm4, %v607_v8, %v608_v17  ;;  %v498_v22 = vand.u32 2147483647, %v416_v19 }
 0x110   : > { %v662_v23 = vmax.f32 %v580_v18, %v638_v21  ;;  %v3321_v24 = vpop.f32.mrf.mxu0  ;;  %v581_v27 = vmax.f32 %v556_v20, %v497_v13 }
 0x111   : > { %v525_v25 = vrot.slane %v498_v22, 7  ;;  %v609_v26 = vrot.slane %v498_v22, 1 }
 0x112   : > { %690 = vst.msk [vmem:[#allocation2 + $0x58] sm:$0xff] %vm678_vm5, %v662_v23  ;;  %v421_v28 = vpop.f32.mrf.mxu0 }
 0x113   : > { %v555_v29 = vsel %vm541_vm3, %v524_v16, %v525_v25  ;;  %v637_v30 = vsel %vm623_vm4, %v608_v17, %v609_v26  ;;  %v499_v31 = vand.u32 2147483647, %v421_v28 }
 0x114   : > { %v663_v32 = vmax.f32 %v581_v27, %v637_v30  ;;  %v3324_v33 = vpop.f32.mrf.mxu0  ;;  %v582_v39 = vmax.f32 %v555_v29, %v498_v22 }
 0x115   : > { %v526_v34 = vrot.slane %v499_v31, 7  ;;  %v610_v37 = vrot.slane %v499_v31, 1 }
 0x116   : > { %691 = vst.msk [vmem:[#allocation2 + $0x60] sm:$0xff] %vm678_vm5, %v663_v32  ;;  %v426_v41 = vpop.f32.mrf.mxu0 }
 0x117   : > { %v554_v42 = vsel %vm541_vm3, %v525_v25, %v526_v34  ;;  %v636_v43 = vsel %vm623_vm4, %v609_v26, %v610_v37  ;;  %v500_v44 = vand.u32 2147483647, %v426_v41  ;;  %v4061_v26 = vld [vmem:[%s4976_s1 + $0x1] ss:$0 sm:$0xff] }
 0x118   : > { %v664_v45 = vmax.f32 %v582_v39, %v636_v43  ;;  %v3327_v47 = vpop.f32.mrf.mxu0  ;;  %v583_v50 = vmax.f32 %v554_v42, %v499_v31 }
 0x119   : > { %v527_v48 = vrot.slane %v500_v44, 7  ;;  %v611_v49 = vrot.slane %v500_v44, 1 }
 0x11a   : > { %692 = vst.msk [vmem:[#allocation2 + $0x68] sm:$0xff] %vm678_vm5, %v664_v45  ;;  %v431_v51 = vpop.f32.mrf.mxu0 }
 0x11b   : > { %v553_v52 = vsel %vm541_vm3, %v526_v34, %v527_v48  ;;  %v635_v53 = vsel %vm623_vm4, %v610_v37, %v611_v49  ;;  %v501_v54 = vand.u32 2147483647, %v431_v51 }
 0x11c   : > { %v665_v55 = vmax.f32 %v583_v50, %v635_v53  ;;  %v3330_v56 = vpop.f32.mrf.mxu0  ;;  %v584_v59 = vmax.f32 %v553_v52, %v500_v44 }
 0x11d   : > { %v528_v57 = vrot.slane %v501_v54, 7  ;;  %v612_v58 = vrot.slane %v501_v54, 1 }
 0x11e   : > { %693 = vst.msk [vmem:[#allocation2 + $0x70] sm:$0xff] %vm678_vm5, %v665_v55  ;;  %v436_v60 = vpop.f32.mrf.mxu0 }
 0x11f   : > { %v552_v61 = vsel %vm541_vm3, %v527_v48, %v528_v57  ;;  %v634_v62 = vsel %vm623_vm4, %v611_v49, %v612_v58  ;;  %v502_v63 = vand.u32 2147483647, %v436_v60 }
 0x120   : > { %v666_v0 = vmax.f32 %v584_v59, %v634_v62  ;;  %v3333_v2 = vpop.f32.mrf.mxu0  ;;  %v585_v5 = vmax.f32 %v552_v61, %v501_v54  ;;  %v4085_v62 = vld [vmem:[%s4976_s1 + $0x2] ss:$0 sm:$0xff] }
 0x121   : > { %v529_v3 = vrot.slane %v502_v63, 7  ;;  %v613_v4 = vrot.slane %v502_v63, 1 }
 0x122   : > { %694 = vst.msk [vmem:[#allocation2 + $0x78] sm:$0xff] %vm678_vm5, %v666_v0  ;;  %v441_v6 = vpop.f32.mrf.mxu0 }
 0x123   : > { %v551_v7 = vsel %vm541_vm3, %v528_v57, %v529_v3  ;;  %v633_v8 = vsel %vm623_vm4, %v612_v58, %v613_v4  ;;  %v503_v9 = vand.u32 2147483647, %v441_v6 }
 0x124   : > { %v667_v10 = vmax.f32 %v585_v5, %v633_v8  ;;  %v3336_v11 = vpop.f32.mrf.mxu0  ;;  %v586_v16 = vmax.f32 %v551_v7, %v502_v63 }
 0x125   : > { %v530_v12 = vrot.slane %v503_v9, 7  ;;  %v614_v13 = vrot.slane %v503_v9, 1  ;;  %v715_v15 = vld [vmem:[#allocation2 + $0x61] ss:$3 sm:$0xff]  ;;  %v4098_v11 = vld [vmem:[%s4976_s1 + $0x3] ss:$0 sm:$0xff] }
 0x126   : > { %695 = vst.msk [vmem:[#allocation2 + $0x80] sm:$0xff] %vm678_vm5, %v667_v10  ;;  %v446_v17 = vpop.f32.mrf.mxu0  ;;  %v733_v18 = vmul.f32 %v4050_v14, %v715_v15 }
 0x127   : > { %v550_v19 = vsel %vm541_vm3, %v529_v3, %v530_v12  ;;  %v632_v20 = vsel %vm623_vm4, %v613_v4, %v614_v13  ;;  %v504_v21 = vand.u32 2147483647, %v446_v17 }
 0x128   : > { %v668_v22 = vmax.f32 %v586_v16, %v632_v20  ;;  %v3339_v23 = vpop.f32.mrf.mxu0  ;;  %v587_v27 = vmax.f32 %v550_v19, %v503_v9  ;;  %v747_v29 = vadd.f32 %v4061_v26, %v733_v18 }
 0x129   : > { %v531_v24 = vrot.slane %v504_v21, 7  ;;  %v615_v25 = vrot.slane %v504_v21, 1 }
 0x12a   : > { %696 = vst.msk [vmem:[#allocation2 + $0x88] sm:$0xff] %vm678_vm5, %v668_v22  ;;  %v451_v28 = vpop.f32.mrf.mxu0  ;;  %v765_v43 = vmul.f32 0.2, %v747_v29  ;;  %vm756_vm6 = vcmp.ge.f32.partialorder %v747_v29, 0.0 }
 0x12b   : > { %v549_v30 = vsel %vm541_vm3, %v530_v12, %v531_v24  ;;  %v631_v31 = vsel %vm623_vm4, %v614_v13, %v615_v25  ;;  %v505_v32 = vand.u32 2147483647, %v451_v28 }
 0x12c   : > { %v669_v33 = vmax.f32 %v587_v27, %v631_v31  ;;  %v3342_v34 = vpop.f32.mrf.mxu0  ;;  %v588_v41 = vmax.f32 %v549_v30, %v504_v21  ;;  %v4075_v55 = vsel %vm756_vm6, %v747_v29, %v765_v43 }
 0x12d   : > { %v532_v37 = vrot.slane %v505_v32, 7  ;;  %v616_v39 = vrot.slane %v505_v32, 1  ;;  %v788_v2 = vmul.f32 %v4085_v62, %v4075_v55 }
 0x12e   : > { %697 = vst.msk [vmem:[#allocation2 + $0x90] sm:$0xff] %vm678_vm5, %v669_v33  ;;  %v456_v42 = vpop.f32.mrf.mxu0 }
 0x12f   : > { %v548_v44 = vsel %vm541_vm3, %v531_v24, %v532_v37  ;;  %v630_v45 = vsel %vm623_vm4, %v615_v25, %v616_v39  ;;  %v506_v47 = vand.u32 2147483647, %v456_v42  ;;  %v802_v15 = vadd.f32 %v4098_v11, %v788_v2 }
 0x130   : > { %v670_v48 = vmax.f32 %v588_v41, %v630_v45  ;;  %v3345_v49 = vpop.f32.mrf.mxu0  ;;  %v589_v53 = vmax.f32 %v548_v44, %v505_v32 }
 0x131   : > { %v533_v50 = vrot.slane %v506_v47, 7  ;;  %v617_v51 = vrot.slane %v506_v47, 1  ;;  %v717_v52 = vld [vmem:[#allocation2 + $0x79] ss:$3 sm:$0xff]  ;;  %v820_v29 = vmul.f32 0.2, %v802_v15 }
 0x132   : > { %698 = vst.msk [vmem:[#allocation2 + $0x98] sm:$0xff] %vm678_vm5, %v670_v48  ;;  %v461_v54 = vpop.f32.mrf.mxu0  ;;  %v734_v56 = vmul.f32 %v4050_v14, %v717_v52  ;;  %vm811_vm8 = vcmp.ge.f32.partialorder %v802_v15, 0.0 }
 0x133   : > { %v547_v57 = vsel %vm541_vm3, %v532_v37, %v533_v50  ;;  %v629_v58 = vsel %vm623_vm4, %v616_v39, %v617_v51  ;;  %v507_v59 = vand.u32 2147483647, %v461_v54  ;;  %v4117_v48 = vsel %vm811_vm8, %v802_v15, %v820_v29 }
 0x134   : > { %v671_v60 = vmax.f32 %v589_v53, %v629_v58  ;;  %v3348_v61 = vpop.f32.mrf.mxu0  ;;  %v748_v3 = vadd.f32 %v4061_v26, %v734_v56  ;;  %v590_v4 = vmax.f32 %v547_v57, %v506_v47 }
 0x135   : > { %v534_v63 = vrot.slane %v507_v59, 7  ;;  %v618_v0 = vrot.slane %v507_v59, 1 }
 0x136   : > { %699 = vst.msk [vmem:[#allocation2 + $0xa0] sm:$0xff] %vm678_vm5, %v671_v60  ;;  %v466_v5 = vpop.f32.mrf.mxu0  ;;  %vm757_vm7 = vcmp.ge.f32.partialorder %v748_v3, 0.0  ;;  %v766_v16 = vmul.f32 0.2, %v748_v3 }
 0x137   : > { %v546_v6 = vsel %vm541_vm3, %v533_v50, %v534_v63  ;;  %v628_v7 = vsel %vm623_vm4, %v617_v51, %v618_v0  ;;  %v508_v8 = vand.u32 2147483647, %v466_v5  ;;  %v596_v5 = vrot.slane %v3952_v36, 1 }
 0x138   : > { %v672_v9 = vmax.f32 %v590_v4, %v628_v7  ;;  %v3351_v10 = vpop.f32.mrf.mxu0  ;;  %v591_v17 = vmax.f32 %v546_v6, %v507_v59  ;;  %v4106_v22 = vsel %vm757_vm7, %v748_v3, %v766_v16  ;;  %v891_v59 = vrot.slane %v4117_v48, 1  ;;  %v709_v3 = vld [vmem:[#allocation2 + $0x19] ss:$3 sm:$0xff] }
 0x139   : > { %v535_v12 = vrot.slane %v508_v8, 7  ;;  %v619_v13 = vrot.slane %v508_v8, 1  ;;  %v789_v25 = vmul.f32 %v4085_v62, %v4106_v22  ;;  %v649_v15 = vsel %vm623_vm4, %v596_v5, %v597_v46 }
 0x13a   : > { %700 = vst.msk [vmem:[#allocation2 + $0xa8] sm:$0xff] %vm678_vm5, %v672_v9  ;;  %v471_v18 = vpop.f32.mrf.mxu0 }
 0x13b   : > { %v545_v19 = vsel %vm541_vm3, %v534_v63, %v535_v12  ;;  %v627_v20 = vsel %vm623_vm4, %v618_v0, %v619_v13  ;;  %v509_v21 = vand.u32 2147483647, %v471_v18  ;;  %v803_v33 = vadd.f32 %v4098_v11, %v789_v25 }
 0x13c   : > { %v673_v23 = vmax.f32 %v591_v17, %v627_v20  ;;  %v3354_v24 = vpop.f32.mrf.mxu0  ;;  %v592_v31 = vmax.f32 %v545_v19, %v508_v8  ;;  %v730_v17 = vmul.f32 %v4050_v14, %v709_v3 }
 0x13d   : > { %v536_v27 = vrot.slane %v509_v21, 7  ;;  %v620_v28 = vrot.slane %v509_v21, 1  ;;  %v719_v30 = vld [vmem:[#allocation2 + $0x91] ss:$3 sm:$0xff]  ;;  %vm812_vm9 = vcmp.ge.f32.partialorder %v803_v33, 0.0 }
 0x13e   : > { %701 = vst.msk [vmem:[#allocation2 + $0xb0] sm:$0xff] %vm678_vm5, %v673_v23  ;;  %v476_v32 = vpop.f32.mrf.mxu0  ;;  %v735_v34 = vmul.f32 %v4050_v14, %v719_v30  ;;  %v821_v44 = vmul.f32 0.2, %v803_v33  ;;  %v744_v23 = vadd.f32 %v4061_v26, %v730_v17 }
 0x13f   : > { %v544_v37 = vsel %vm541_vm3, %v535_v12, %v536_v27  ;;  %v626_v39 = vsel %vm623_vm4, %v619_v13, %v620_v28  ;;  %v510_v41 = vand.u32 2147483647, %v476_v32 }
 0x140   : > { %v674_v42 = vmax.f32 %v592_v31, %v626_v39  ;;  %v3357_v43 = vpop.f32.mrf.mxu0  ;;  %v749_v49 = vadd.f32 %v4061_v26, %v735_v34  ;;  %v593_v50 = vmax.f32 %v544_v37, %v509_v21  ;;  %v4121_v52 = vsel %vm812_vm9, %v803_v33, %v821_v44  ;;  %v711_v21 = vld [vmem:[#allocation2 + $0x31] ss:$3 sm:$0xff] }
 0x141   : > { %v537_v45 = vrot.slane %v510_v41, 7  ;;  %v621_v47 = vrot.slane %v510_v41, 1  ;;  %v892_v60 = vrot.slane %v4121_v52, 1  ;;  %v731_v25 = vmul.f32 %v4050_v14, %v711_v21 }
 0x142   : > { %702 = vst.msk [vmem:[#allocation2 + $0xb8] sm:$0xff] %vm678_vm5, %v674_v42  ;;  %v481_v51 = vpop.f32.mrf.mxu0  ;;  %vm758_vm10 = vcmp.ge.f32.partialorder %v749_v49, 0.0  ;;  %v767_v0 = vmul.f32 0.2, %v749_v49  ;;  %v762_v32 = vmul.f32 0.2, %v744_v23 }
 0x143   : > { %v543_v53 = vsel %vm541_vm3, %v536_v27, %v537_v45  ;;  %v625_v54 = vsel %vm623_vm4, %v620_v28, %v621_v47  ;;  %v511_v56 = vand.u32 2147483647, %v481_v51  ;;  %v4134_v4 = vsel %vm623_vm4, %v891_v59, %v892_v60  ;;  %v713_v28 = vld [vmem:[#allocation2 + $0x49] ss:$3 sm:$0xff] }
 0x144   : > { %v675_v57 = vmax.f32 %v593_v50, %v625_v54  ;;  %v3360_v58 = vpop.f32.mrf.mxu0  ;;  %v594_v2 = vmax.f32 %v543_v53, %v510_v41  ;;  %v4146_v13 = vsel %vm758_vm10, %v749_v49, %v767_v0  ;;  %vm753_vm13 = vcmp.ge.f32.partialorder %v744_v23, 0.0 }
 0x145   : > { %v538_v61 = vrot.slane %v511_v56, 7  ;;  %v622_v63 = vrot.slane %v511_v56, 1  ;;  %v745_v34 = vadd.f32 %v4061_v26, %v731_v25  ;;  %v732_v37 = vmul.f32 %v4050_v14, %v713_v28 }
 0x146   : > { %703 = vst.msk [vmem:[#allocation2 + $0xc0] sm:$0xff] %vm678_vm5, %v675_v57 }
 0x147   : > { %v542_v6 = vsel %vm541_vm3, %v537_v45, %v538_v61  ;;  %v568_v7 = vsel %vm541_vm3, %v538_v61, %v512_v40  ;;  %v624_v8 = vsel %vm623_vm4, %v621_v47, %v622_v63  ;;  %v650_v16 = vsel %vm623_vm4, %v622_v63, %v596_v5 }
 0x148   : > { %v569_v9 = vmax.f32 %v568_v7, %v3952_v36  ;;  %v595_v10 = vmax.f32 %v542_v6, %v511_v56  ;;  %v676_v12 = vmax.f32 %v594_v2, %v624_v8  ;;  %v790_v40 = vmul.f32 %v4085_v62, %v4146_v13 }
 0x149   : > { %v721_v18 = vld [vmem:[#allocation2 + $0xa9] ss:$3 sm:$0xff]  ;;  %v4181_v47 = vsel %vm753_vm13, %v744_v23, %v762_v32  ;;  %v763_v51 = vmul.f32 0.2, %v745_v34  ;;  %v746_v53 = vadd.f32 %v4061_v26, %v732_v37  ;;  %vm754_vm15 = vcmp.ge.f32.partialorder %v745_v34, 0.0 }
 0x14a   : > { %v651_v19 = vmax.f32 %v569_v9, %v649_v15  ;;  %v677_v36 = vmax.f32 %v595_v10, %v650_v16  ;;  %704 = vst.msk [vmem:[#allocation2 + $0xc8] sm:$0xff] %vm678_vm5, %v676_v12  ;;  %v736_v20 = vmul.f32 %v4050_v14, %v721_v18  ;;  %v804_v38 = vadd.f32 %v4098_v11, %v790_v40  ;;  %v914_v15 = vld [vmem:[%s4977_s2 + $0x18] sm:$0xff] }
 0x14b   : > { %v785_v58 = vmul.f32 %v4085_v62, %v4181_v47  ;;  %v4193_v63 = vsel %vm754_vm15, %v745_v34, %v763_v51  ;;  %v764_v0 = vmul.f32 0.2, %v746_v53  ;;  %vm755_vm6 = vcmp.ge.f32.partialorder %v746_v53, 0.0 }
 0x14c   : > { %679 = vst.msk [vmem:[#allocation2] sm:$0xff] %vm678_vm5, %v651_v19  ;;  %705 = vst.msk [vmem:[#allocation2 + $0xd0] sm:$0xff] %vm678_vm5, %v677_v36  ;;  %v750_v46 = vadd.f32 %v4061_v26, %v736_v20  ;;  %vm813_vm11 = vcmp.ge.f32.partialorder %v804_v38, 0.0  ;;  %v822_v24 = vmul.f32 0.2, %v804_v38  ;;  %v786_v8 = vmul.f32 %v4085_v62, %v4193_v63 }
 0x14d   : > { %v799_v5 = vadd.f32 %v4098_v11, %v785_v58  ;;  %v4209_v9 = vsel %vm755_vm6, %v746_v53, %v764_v0 }
 0x14e   : > { %vm759_vm12 = vcmp.ge.f32.partialorder %v750_v46, 0.0  ;;  %v768_v27 = vmul.f32 0.2, %v750_v46  ;;  %v4165_v29 = vsel %vm813_vm11, %v804_v38, %v822_v24  ;;  %v800_v18 = vadd.f32 %v4098_v11, %v786_v8 }
 0x14f   : > { %v893_v30 = vrot.slane %v4165_v29, 1  ;;  %v817_v16 = vmul.f32 0.2, %v799_v5  ;;  %vm808_vm9 = vcmp.ge.f32.partialorder %v799_v5, 0.0  ;;  %v787_v19 = vmul.f32 %v4085_v62, %v4209_v9 }
 0x150   : > { %v4168_v31 = vsel %vm759_vm12, %v750_v46, %v768_v27  ;;  %v818_v46 = vmul.f32 0.2, %v800_v18  ;;  %vm809_vm10 = vcmp.ge.f32.partialorder %v800_v18, 0.0  ;;  %vm842_vm12 = vcmp.eq.s32.totalorder %v3950_v35, 0 }
 0x151   : > { %v791_v33 = vmul.f32 %v4085_v62, %v4168_v31  ;;  %v4176_v39 = vsel %vm623_vm4, %v892_v60, %v893_v30  ;;  %v4228_v38 = vsel %vm808_vm9, %v799_v5, %v817_v16  ;;  %v857_v53 = vrot.slane %v4165_v29, 7  ;;  %v1460_v5 = vld [vmem:[%s4977_s2 + $0x30] sm:$0xff] }
 0x152   : > { %v4246_v25 = vsel %vm809_vm10, %v800_v18, %v818_v46  ;;  %v852_v37 = vrot.slane %v4228_v38, 7  ;;  %3478 = vmatpush3.msra.mxu0 %v1460_v5 }
 0x153   : > { %v707_v41 = vld [vmem:[#allocation2 + $0x1] ss:$3 sm:$0xff]  ;;  %v805_v42 = vadd.f32 %v4098_v11, %v791_v33  ;;  %3535 = vmatprep.subr.mxu0 %v3742_v1 }
 0x154   : > { %v723_v43 = vld [vmem:[#allocation2 + $0xc1] ss:$3 sm:$0xff]  ;;  %v729_v44 = vmul.f32 %v4050_v14, %v707_v41  ;;  %v853_v41 = vrot.slane %v4246_v25, 7 }
 0x155   : > { %v737_v45 = vmul.f32 %v4050_v14, %v723_v43  ;;  %vm814_vm14 = vcmp.ge.f32.partialorder %v805_v42, 0.0  ;;  %v823_v49 = vmul.f32 0.2, %v805_v42  ;;  %v1190_v33 = vld [vmem:[%s4977_s2 + $0x28] sm:$0xff] }
 0x156   : > { %v743_v50 = vadd.f32 %v4061_v26, %v729_v44  ;;  %v866_v44 = vsel %vm541_vm3, %v852_v37, %v853_v41 }
 0x157   : > { %v751_v54 = vadd.f32 %v4061_v26, %v737_v45  ;;  %v4186_v56 = vsel %vm814_vm14, %v805_v42, %v823_v49  ;;  %v855_v45 = vrot.slane %v4117_v48, 7 }
 0x158   : > { %vm752_vm0 = vcmp.ge.f32.partialorder %v743_v50, 0.0  ;;  %v761_v57 = vmul.f32 0.2, %v743_v50  ;;  %v894_v14 = vrot.slane %v4186_v56, 1 }
 0x159   : > { %vm760_vm2 = vcmp.ge.f32.partialorder %v751_v54, 0.0  ;;  %v769_v60 = vmul.f32 0.2, %v751_v54 }
 0x15a   : > { %v4191_v61 = vsel %vm752_vm0, %v743_v50, %v761_v57  ;;  %v4197_v26 = vsel %vm623_vm4, %v893_v30, %v894_v14  ;;  %v856_v50 = vrot.slane %v4121_v52, 7 }
 0x15b   : > { %v784_v2 = vmul.f32 %v4085_v62, %v4191_v61  ;;  %v4201_v3 = vsel %vm760_vm2, %v751_v54, %v769_v60 }
 0x15c   : > { %v792_v6 = vmul.f32 %v4085_v62, %v4201_v3  ;;  %v801_v62 = vadd.f32 %v4098_v11, %v787_v19  ;;  %v863_v54 = vsel %vm541_vm3, %v855_v45, %v856_v50  ;;  %v862_v57 = vsel %vm541_vm3, %v856_v50, %v857_v53 }
 0x15d   : > { %v798_v7 = vadd.f32 %v4098_v11, %v784_v2 }
 0x15e   : > { %v806_v10 = vadd.f32 %v4098_v11, %v792_v6  ;;  %v819_v11 = vmul.f32 0.2, %v801_v62  ;;  %vm810_vm11 = vcmp.ge.f32.partialorder %v801_v62, 0.0 }
 0x15f   : > { %vm807_vm7 = vcmp.ge.f32.partialorder %v798_v7, 0.0  ;;  %v816_v12 = vmul.f32 0.2, %v798_v7 }
 0x160   : > { %vm815_vm8 = vcmp.ge.f32.partialorder %v806_v10, 0.0  ;;  %v824_v17 = vmul.f32 0.2, %v806_v10  ;;  %v4252_v27 = vsel %vm810_vm11, %v801_v62, %v819_v11 }
 0x161   : > { %v4215_v40 = vsel %vm807_vm7, %v798_v7, %v816_v12  ;;  %v854_v43 = vrot.slane %v4252_v27, 7  ;;  %v890_v0 = vrot.slane %v4252_v27, 1 }
 0x162   : > { %v887_v36 = vrot.slane %v4215_v40, 1  ;;  %3364 = vmatmul.mubr.msk.f32.vlgmr.msra.gmra.mxu1 %vm678_vm5, %v4215_v40  ;;  %v4223_v20 = vsel %vm815_vm8, %v806_v10, %v824_v17  ;;  %v851_v28 = vrot.slane %v4215_v40, 7 }
 0x163   : > { %3391 = vmatpush3.msra.mxu1 %v914_v15  ;;  %3366 = vmatprep.mubr.msk.f32.mxu1 %vm3743_vm1, %v3742_v1  ;;  %v895_v21 = vrot.slane %v4223_v20, 1  ;;  %v859_v30 = vrot.slane %v4223_v20, 7  ;;  %v865_v49 = vsel %vm541_vm3, %v853_v41, %v854_v43  ;;  %v864_v51 = vsel %vm541_vm3, %v854_v43, %v855_v45 }
 0x164   : > { %3419 = vmatprep.subr.mxu1 %v3742_v1  ;;  %v867_v42 = vsel %vm541_vm3, %v851_v28, %v852_v37  ;;  %v900_v7 = vsel %vm623_vm4, %v890_v0, %v891_v59 }
 0x165   : > { %v4234_v23 = vsel %vm623_vm4, %v894_v14, %v895_v21  ;;  %v4240_v24 = vsel %vm623_vm4, %v895_v21, %v887_v36  ;;  %v868_v32 = vsel %vm541_vm3, %v859_v30, %v851_v28  ;;  %v889_v14 = vrot.slane %v4246_v25, 1 }
 0x166   : > { %3367 = vmatmul.mubr.msk.f32.gmra.mxu1 %vm678_vm5, %v4228_v38  ;;  %v869_v34 = vsel %vm842_vm12, 0.0, %v868_v32 }
 0x167   : > { %3369 = vmatprep.mubr.msk.f32.mxu1 %vm3743_vm1, %v3742_v1  ;;  %v901_v6 = vsel %vm623_vm4, %v889_v14, %v890_v0 }
 0x16a   : > { %3370 = vmatmul.mubr.msk.f32.gmra.mxu1 %vm678_vm5, %v4246_v25 }
 0x16b   : > { %3372 = vmatprep.mubr.msk.f32.mxu1 %vm3743_vm1, %v3742_v1 }
 0x16e   : > { %3373 = vmatmul.mubr.msk.f32.gmra.mxu1 %vm678_vm5, %v4252_v27 }
 0x16f   : > { %3375 = vmatprep.mubr.msk.f32.mxu1 %vm3743_vm1, %v3742_v1 }
 0x172   : > { %3376 = vmatmul.mubr.msk.f32.gmra.mxu1 %vm678_vm5, %v4117_v48  ;;  %v4381_v48 = vadd.s32 64, %v3950_v35 }
 0x173   : > { %3378 = vmatprep.mubr.msk.f32.mxu1 %vm3743_vm1, %v3742_v1 }
 0x174   : > { %vm886_vm13 = vcmp.eq.s32.totalorder %v4381_v48, 71 }
 0x175   : > { %v913_v59 = vsel %vm886_vm13, 0.0, %v4240_v24 }
 0x176   : > { %3379 = vmatmul.mubr.msk.f32.gmra.mxu1 %vm678_vm5, %v4121_v52  ;;  %v858_v52 = vrot.slane %v4186_v56, 7 }
 0x177   : > { %3381 = vmatprep.mubr.msk.f32.mxu1 %vm3743_vm1, %v3742_v1 }
 0x178   : > { %v860_v58 = vsel %vm541_vm3, %v858_v52, %v859_v30 }
 0x17a   : > { %3382 = vmatmul.mubr.msk.f32.gmra.mxu1 %vm678_vm5, %v4165_v29  ;;  %v861_v29 = vsel %vm541_vm3, %v857_v53, %v858_v52  ;;  %v4421_v52 = vld [vmem:[%s4976_s1 + $0x4] ss:$0 sm:$0xff] }
 0x17b   : > { %3384 = vmatprep.mubr.msk.f32.mxu1 %vm3743_vm1, %v3742_v1 }
 0x17e   : > { %3385 = vmatmul.mubr.msk.f32.gmra.mxu1 %vm678_vm5, %v4186_v56  ;;  %v888_v56 = vrot.slane %v4228_v38, 1 }
 0x17f   : > { %3387 = vmatprep.mubr.msk.f32.mxu1 %vm3743_vm1, %v3742_v1 }
 0x180   : > { %v903_v60 = vsel %vm623_vm4, %v887_v36, %v888_v56  ;;  %v902_v2 = vsel %vm623_vm4, %v888_v56, %v889_v14 }
 0x182   : > { %3388 = vmatmul.mubr.msk.f32.gmra.mxu1 %vm678_vm5, %v4223_v20 }
 0x183   : > { %3392 = vmatprep.mubr.msk.f32.mxu1 %vm3743_vm1, %v3742_v1 }
 0x186   : > { %3393 = vmatmul.mubr.msk.f32.vlgmr.msra.gmra.mxu1 %vm678_vm5, %v869_v34 }
 0x187   : > { %3420 = vmatpush3.msra.mxu1 %v1190_v33  ;;  %3395 = vmatprep.mubr.msk.f32.mxu1 %vm3743_vm1, %v3742_v1 }
 0x188   : > { %3448 = vmatprep.subr.mxu1 %v3742_v1 }
 0x18a   : > { %3396 = vmatmul.mubr.msk.f32.gmra.mxu1 %vm678_vm5, %v867_v42 }
 0x18b   : > { %3398 = vmatprep.mubr.msk.f32.mxu1 %vm3743_vm1, %v3742_v1 }
 0x18e   : > { %3399 = vmatmul.mubr.msk.f32.gmra.mxu1 %vm678_vm5, %v866_v44 }
 0x18f   : > { %3401 = vmatprep.mubr.msk.f32.mxu1 %vm3743_vm1, %v3742_v1 }
 0x192   : > { %3402 = vmatmul.mubr.msk.f32.gmra.mxu1 %vm678_vm5, %v865_v49 }
 0x193   : > { %3404 = vmatprep.mubr.msk.f32.mxu1 %vm3743_vm1, %v3742_v1 }
 0x196   : > { %3405 = vmatmul.mubr.msk.f32.gmra.mxu1 %vm678_vm5, %v864_v51 }
 0x197   : > { %3407 = vmatprep.mubr.msk.f32.mxu1 %vm3743_vm1, %v3742_v1 }
 0x19a   : > { %3408 = vmatmul.mubr.msk.f32.gmra.mxu1 %vm678_vm5, %v863_v54 }
 0x19b   : > { %3410 = vmatprep.mubr.msk.f32.mxu1 %vm3743_vm1, %v3742_v1 }
 0x19e   : > { %3411 = vmatmul.mubr.msk.f32.gmra.mxu1 %vm678_vm5, %v862_v57 }
 0x19f   : > { %3413 = vmatprep.mubr.msk.f32.mxu1 %vm3743_vm1, %v3742_v1 }
 0x1a2   : > { %3414 = vmatmul.mubr.msk.f32.gmra.mxu1 %vm678_vm5, %v861_v29  ;;  %v4426_v29 = vld [vmem:[%s4976_s1 + $0x5] ss:$0 sm:$0xff] }
 0x1a3   : > { %3416 = vmatprep.mubr.msk.f32.mxu1 %vm3743_vm1, %v3742_v1 }
 0x1a6   : > { %3417 = vmatmul.mubr.msk.f32.gmra.mxu1 %vm678_vm5, %v860_v58 }
 0x1a7   : > { %3421 = vmatprep.mubr.msk.f32.mxu1 %vm3743_vm1, %v3742_v1 }
 0x1aa   : > { %3422 = vmatmul.mubr.msk.f32.vlgmr.msra.gmra.mxu1 %vm678_vm5, %v903_v60  ;;  %v4432_v60 = vld [vmem:[%s4976_s1 + $0x6] ss:$0 sm:$0xff] }
 0x1ab   : > { %3424 = vmatprep.mubr.msk.f32.mxu1 %vm3743_vm1, %v3742_v1 }
 0x1ae   : > { %3425 = vmatmul.mubr.msk.f32.gmra.mxu1 %vm678_vm5, %v902_v2 }
 0x1af   : > { %3427 = vmatprep.mubr.msk.f32.mxu1 %vm3743_vm1, %v3742_v1 }
 0x1b2   : > { %3428 = vmatmul.mubr.msk.f32.gmra.mxu1 %vm678_vm5, %v901_v6 }
 0x1b3   : > { %3430 = vmatprep.mubr.msk.f32.mxu1 %vm3743_vm1, %v3742_v1 }
 0x1b6   : > { %3431 = vmatmul.mubr.msk.f32.gmra.mxu1 %vm678_vm5, %v900_v7 }
 0x1b7   : > { %3433 = vmatprep.mubr.msk.f32.mxu1 %vm3743_vm1, %v3742_v1 }
 0x1ba   : > { %3434 = vmatmul.mubr.msk.f32.gmra.mxu1 %vm678_vm5, %v4134_v4  ;;  %v1461_v4 = vld [vmem:[%s4977_s2 + $0x38] sm:$0xff] }
 0x1bb   : > { %3436 = vmatprep.mubr.msk.f32.mxu1 %vm3743_vm1, %v3742_v1  ;;  %3449 = vmatpush3.msra.mxu1 %v1461_v4 }
 0x1bc   : > { %3506 = vmatprep.subr.mxu1 %v3742_v1 }
 0x1be   : > { %3437 = vmatmul.mubr.msk.f32.gmra.mxu1 %vm678_vm5, %v4176_v39 }
 0x1bf   : > { %3439 = vmatprep.mubr.msk.f32.mxu1 %vm3743_vm1, %v3742_v1 }
 0x1c2   : > { %3440 = vmatmul.mubr.msk.f32.gmra.mxu1 %vm678_vm5, %v4197_v26 }
 0x1c3   : > { %3442 = vmatprep.mubr.msk.f32.mxu1 %vm3743_vm1, %v3742_v1 }
 0x1c6   : > { %3443 = vmatmul.mubr.msk.f32.gmra.mxu1 %vm678_vm5, %v4234_v23 }
 0x1c7   : > { %3445 = vmatprep.mubr.msk.f32.mxu1 %vm3743_vm1, %v3742_v1 }
 0x1ca   : > { %3446 = vmatmul.mubr.msk.f32.gmra.mxu1 %vm678_vm5, %v913_v59 }
 0x1cb   : > { %3450 = vmatprep.mubr.msk.f32.mxu1 %vm3743_vm1, %v3742_v1 }
 0x222   : > { %v1009_v39 = vpop.f32.mrf.mxu1 }
 0x224   : > { %v3365_v26 = vpop.f32.mrf.mxu1 }
 0x226   : > { %v1014_v8 = vpop.f32.mrf.mxu1 }
 0x228   : > { %v3368_v10 = vpop.f32.mrf.mxu1 }
 0x22a   : > { %v1019_v12 = vpop.f32.mrf.mxu1 }
 0x22c   : > { %v3371_v15 = vpop.f32.mrf.mxu1 }
 0x22e   : > { %v1024_v16 = vpop.f32.mrf.mxu1 }
 0x230   : > { %v3374_v17 = vpop.f32.mrf.mxu1 }
 0x231   : > { %v1736_v17 = vld [vmem:[%s4977_s2 + $0x40] sm:$0xff] }
 0x232   : > { %v4400_v40 = vpop.f32.mrf.mxu1 }
 0x234   : > { %v3377_v18 = vpop.f32.mrf.mxu1 }
 0x236   : > { %v4402_v19 = vpop.f32.mrf.mxu1 }
 0x238   : > { %v3380_v36 = vpop.f32.mrf.mxu1 }
 0x23a   : > { %v4404_v20 = vpop.f32.mrf.mxu1 }
 0x23c   : > { %v3383_v21 = vpop.f32.mrf.mxu1 }
 0x23e   : > { %v4406_v38 = vpop.f32.mrf.mxu1 }
 0x240   : > { %v3386_v46 = vpop.f32.mrf.mxu1 }
 0x242   : > { %v4408_v62 = vpop.f32.mrf.mxu1 }
 0x244   : > { %v3389_v23 = vpop.f32.mrf.mxu1 }
 0x246   : > { %v1146_v24 = vpop.f32.mrf.mxu1 }
 0x247   : > { %v1147_v53 = vadd.f32 %v1146_v24, %v1009_v39 }
 0x248   : > { %v3394_v25 = vpop.f32.mrf.mxu1 }
 0x24a   : > { %v1151_v11 = vpop.f32.mrf.mxu1 }
 0x24b   : > { %v1152_v56 = vadd.f32 %v1151_v11, %v1014_v8 }
 0x24c   : > { %v3397_v27 = vpop.f32.mrf.mxu1 }
 0x24e   : > { %v1156_v28 = vpop.f32.mrf.mxu1 }
 0x24f   : > { %v1157_v7 = vadd.f32 %v1156_v28, %v1019_v12 }
 0x250   : > { %v3400_v30 = vpop.f32.mrf.mxu1 }
 0x252   : > { %v1161_v32 = vpop.f32.mrf.mxu1 }
 0x253   : > { %v1162_v18 = vadd.f32 %v1161_v32, %v1024_v16 }
 0x254   : > { %v3403_v33 = vpop.f32.mrf.mxu1 }
 0x256   : > { %v1166_v34 = vpop.f32.mrf.mxu1 }
 0x257   : > { %v1167_v11 = vadd.f32 %v1166_v34, %v4400_v40 }
 0x258   : > { %v3406_v37 = vpop.f32.mrf.mxu1 }
 0x25a   : > { %v4410_v41 = vpop.f32.mrf.mxu1 }
 0x25c   : > { %v3409_v42 = vpop.f32.mrf.mxu1 }
 0x25e   : > { %v4412_v43 = vpop.f32.mrf.mxu1 }
 0x260   : > { %v3412_v44 = vpop.f32.mrf.mxu1 }
 0x262   : > { %v4414_v45 = vpop.f32.mrf.mxu1 }
 0x264   : > { %v3415_v49 = vpop.f32.mrf.mxu1 }
 0x266   : > { %v4416_v50 = vpop.f32.mrf.mxu1 }
 0x268   : > { %v3418_v51 = vpop.f32.mrf.mxu1 }
 0x26a   : > { %v1284_v54 = vpop.f32.mrf.mxu1 }
 0x26b   : > { %v1328_v57 = vadd.f32 %v1284_v54, %v1147_v53 }
 0x26c   : > { %v3423_v58 = vpop.f32.mrf.mxu1 }
 0x26d   : > { %v1342_v14 = vadd.f32 %v4421_v52, %v1328_v57  ;;  %v1172_v57 = vadd.f32 %v4410_v41, %v4402_v19 }
 0x26e   : > { %v1289_v0 = vpop.f32.mrf.mxu1 }
 0x26f   : > { %v1356_v2 = vmul.f32 %v4426_v29, %v1342_v14  ;;  %v1329_v5 = vadd.f32 %v1289_v0, %v1152_v56 }
 0x270   : > { %v3426_v6 = vpop.f32.mrf.mxu1 }
 0x271   : > { %v1370_v59 = vadd.f32 %v4432_v60, %v1356_v2  ;;  %v1343_v4 = vadd.f32 %v4421_v52, %v1329_v5 }
 0x272   : > { %v1294_v39 = vpop.f32.mrf.mxu1 }
 0x273   : > { %v1388_v26 = vmul.f32 0.2, %v1370_v59  ;;  %v1357_v8 = vmul.f32 %v4426_v29, %v1343_v4  ;;  %v1330_v10 = vadd.f32 %v1294_v39, %v1157_v7  ;;  %vm1379_vm14 = vcmp.ge.f32.partialorder %v1370_v59, 0.0 }
 0x274   : > { %v3429_v15 = vpop.f32.mrf.mxu1  ;;  %v1177_v39 = vadd.f32 %v4412_v43, %v4404_v20 }
 0x275   : > { %v1371_v36 = vadd.f32 %v4432_v60, %v1357_v8  ;;  %v1344_v12 = vadd.f32 %v4421_v52, %v1330_v10  ;;  %v4443_v21 = vsel %vm1379_vm14, %v1370_v59, %v1388_v26 }
 0x276   : > { %v1299_v46 = vpop.f32.mrf.mxu1  ;;  %3451 = vmatmul.mubr.msk.f32.vlgmr.msra.gmra.mxu1 %vm678_vm5, %v4443_v21  ;;  %v1406_v32 = vrot.slane %v4443_v21, 7  ;;  %v1433_v33 = vrot.slane %v4443_v21, 1 }
 0x277   : > { %v1358_v23 = vmul.f32 %v4426_v29, %v1344_v12  ;;  %v1331_v24 = vadd.f32 %v1299_v46, %v1162_v18  ;;  %3507 = vmatpush3.msra.mxu1 %v1736_v17  ;;  %3453 = vmatprep.mubr.msk.f32.mxu1 %vm3743_vm1, %v3742_v1  ;;  %vm1380_vm15 = vcmp.ge.f32.partialorder %v1371_v36, 0.0  ;;  %v1389_v25 = vmul.f32 0.2, %v1371_v36 }
 0x278   : > { %v3432_v16 = vpop.f32.mrf.mxu1  ;;  %3573 = vmatprep.subr.mxu1 %v3742_v1 }
 0x279   : > { %v1372_v27 = vadd.f32 %v4432_v60, %v1358_v23  ;;  %v1345_v28 = vadd.f32 %v4421_v52, %v1331_v24  ;;  %v1398_v30 = vsel %vm1380_vm15, %v1371_v36, %v1389_v25  ;;  %v1182_v24 = vadd.f32 %v4414_v45, %v4406_v38 }
 0x27a   : > { %v1304_v37 = vpop.f32.mrf.mxu1  ;;  %v1407_v42 = vrot.slane %v1398_v30, 7  ;;  %v1434_v44 = vrot.slane %v1398_v30, 1  ;;  %3454 = vmatmul.mubr.msk.f32.gmra.mxu1 %vm678_vm5, %v1398_v30 }
 0x27b   : > { %v1359_v49 = vmul.f32 %v4426_v29, %v1345_v28  ;;  %v1332_v51 = vadd.f32 %v1304_v37, %v1167_v11  ;;  %3456 = vmatprep.mubr.msk.f32.mxu1 %vm3743_vm1, %v3742_v1  ;;  %vm1381_vm0 = vcmp.ge.f32.partialorder %v1372_v27, 0.0  ;;  %v1390_v40 = vmul.f32 0.2, %v1372_v27 }
 0x27c   : > { %v3435_v34 = vpop.f32.mrf.mxu1  ;;  %v4464_v53 = vsel %vm623_vm4, %v1433_v33, %v1434_v44  ;;  %v4470_v54 = vsel %vm541_vm3, %v1406_v32, %v1407_v42 }
 0x27d   : > { %v1373_v58 = vadd.f32 %v4432_v60, %v1359_v49  ;;  %v1346_v56 = vadd.f32 %v4421_v52, %v1332_v51  ;;  %v1399_v14 = vsel %vm1381_vm0, %v1372_v27, %v1390_v40  ;;  %v1187_v51 = vadd.f32 %v4416_v50, %v4408_v62 }
 0x27e   : > { %v1309_v0 = vpop.f32.mrf.mxu1  ;;  %v1408_v2 = vrot.slane %v1399_v14, 7  ;;  %v1435_v5 = vrot.slane %v1399_v14, 1  ;;  %3457 = vmatmul.mubr.msk.f32.gmra.mxu1 %vm678_vm5, %v1399_v14  ;;  %vm2448_vm0 = vcmask 130048  }
 0x27f   : > { %v1360_v6 = vmul.f32 %v4426_v29, %v1346_v56  ;;  %v1333_v7 = vadd.f32 %v1309_v0, %v1172_v57  ;;  %3459 = vmatprep.mubr.msk.f32.mxu1 %vm3743_vm1, %v3742_v1  ;;  %vm1382_vm2 = vcmp.ge.f32.partialorder %v1373_v58, 0.0  ;;  %v1391_v59 = vmul.f32 0.2, %v1373_v58 }
 0x280   : > { %v3438_v4 = vpop.f32.mrf.mxu1  ;;  %v4482_v19 = vsel %vm623_vm4, %v1434_v44, %v1435_v5  ;;  %v4486_v41 = vsel %vm541_vm3, %v1407_v42, %v1408_v2 }
 0x281   : > { %v1374_v26 = vadd.f32 %v4432_v60, %v1360_v6  ;;  %v1347_v8 = vadd.f32 %v4421_v52, %v1333_v7  ;;  %v1400_v10 = vsel %vm1382_vm2, %v1373_v58, %v1391_v59 }
 0x282   : > { %v1314_v15 = vpop.f32.mrf.mxu1  ;;  %v1409_v17 = vrot.slane %v1400_v10, 7  ;;  %v1436_v18 = vrot.slane %v1400_v10, 1  ;;  %3460 = vmatmul.mubr.msk.f32.gmra.mxu1 %vm678_vm5, %v1400_v10 }
 0x283   : > { %v1361_v36 = vmul.f32 %v4426_v29, %v1347_v8  ;;  %v1334_v12 = vadd.f32 %v1314_v15, %v1177_v39  ;;  %3462 = vmatprep.mubr.msk.f32.mxu1 %vm3743_vm1, %v3742_v1  ;;  %vm1383_vm6 = vcmp.ge.f32.partialorder %v1374_v26, 0.0  ;;  %v1392_v46 = vmul.f32 0.2, %v1374_v26 }
 0x284   : > { %v3441_v23 = vpop.f32.mrf.mxu1  ;;  %v4498_v20 = vsel %vm623_vm4, %v1435_v5, %v1436_v18  ;;  %v4502_v43 = vsel %vm541_vm3, %v1408_v2, %v1409_v17 }
 0x285   : > { %v1375_v25 = vadd.f32 %v4432_v60, %v1361_v36  ;;  %v1348_v16 = vadd.f32 %v4421_v52, %v1334_v12  ;;  %v1401_v11 = vsel %vm1383_vm6, %v1374_v26, %v1392_v46 }
 0x286   : > { %v1319_v27 = vpop.f32.mrf.mxu1  ;;  %v1410_v28 = vrot.slane %v1401_v11, 7  ;;  %v1437_v30 = vrot.slane %v1401_v11, 1  ;;  %3463 = vmatmul.mubr.msk.f32.gmra.mxu1 %vm678_vm5, %v1401_v11 }
 0x287   : > { %v1362_v37 = vmul.f32 %v4426_v29, %v1348_v16  ;;  %v1335_v42 = vadd.f32 %v1319_v27, %v1182_v24  ;;  %3465 = vmatprep.mubr.msk.f32.mxu1 %vm3743_vm1, %v3742_v1  ;;  %vm1384_vm7 = vcmp.ge.f32.partialorder %v1375_v25, 0.0  ;;  %v1393_v44 = vmul.f32 0.2, %v1375_v25 }
 0x288   : > { %v3444_v49 = vpop.f32.mrf.mxu1  ;;  %v4514_v38 = vsel %vm623_vm4, %v1436_v18, %v1437_v30  ;;  %v4518_v45 = vsel %vm541_vm3, %v1409_v17, %v1410_v28 }
 0x289   : > { %v1376_v40 = vadd.f32 %v4432_v60, %v1362_v37  ;;  %v1349_v34 = vadd.f32 %v4421_v52, %v1335_v42  ;;  %v1402_v57 = vsel %vm1384_vm7, %v1375_v25, %v1393_v44 }
 0x28a   : > { %v1324_v58 = vpop.f32.mrf.mxu1  ;;  %v1411_v56 = vrot.slane %v1402_v57, 7  ;;  %v1438_v14 = vrot.slane %v1402_v57, 1  ;;  %3466 = vmatmul.mubr.msk.f32.gmra.mxu1 %vm678_vm5, %v1402_v57 }
 0x28b   : > { %v1363_v0 = vmul.f32 %v4426_v29, %v1349_v34  ;;  %v1336_v2 = vadd.f32 %v1324_v58, %v1187_v51  ;;  %3468 = vmatprep.mubr.msk.f32.mxu1 %vm3743_vm1, %v3742_v1  ;;  %vm1385_vm8 = vcmp.ge.f32.partialorder %v1376_v40, 0.0  ;;  %v1394_v5 = vmul.f32 0.2, %v1376_v40 }
 0x28c   : > { %v3447_v6 = vpop.f32.mrf.mxu1  ;;  %v1445_v62 = vsel %vm623_vm4, %v1437_v30, %v1438_v14  ;;  %v1418_v50 = vsel %vm541_vm3, %v1410_v28, %v1411_v56 }
 0x28d   : > { %v1377_v7 = vadd.f32 %v4432_v60, %v1363_v0  ;;  %v1350_v59 = vadd.f32 %v4421_v52, %v1336_v2  ;;  %v1403_v4 = vsel %vm1385_vm8, %v1376_v40, %v1394_v5  ;;  %v4644_v0 = vld [vmem:[%s4976_s1 + $0x7] ss:$0 sm:$0xff] }
 0x28e   : > { %v1412_v39 = vrot.slane %v1403_v4, 7  ;;  %v1439_v26 = vrot.slane %v1403_v4, 1  ;;  %3469 = vmatmul.mubr.msk.f32.gmra.mxu1 %vm678_vm5, %v1403_v4 }
 0x28f   : > { %v1364_v8 = vmul.f32 %v4426_v29, %v1350_v59  ;;  %3471 = vmatprep.mubr.msk.f32.mxu1 %vm3743_vm1, %v3742_v1  ;;  %vm1386_vm9 = vcmp.ge.f32.partialorder %v1377_v7, 0.0  ;;  %v1395_v10 = vmul.f32 0.2, %v1377_v7 }
 0x290   : > { %v1444_v15 = vsel %vm623_vm4, %v1438_v14, %v1439_v26  ;;  %v1417_v17 = vsel %vm541_vm3, %v1411_v56, %v1412_v39 }
 0x291   : > { %v1378_v52 = vadd.f32 %v4432_v60, %v1364_v8  ;;  %v1404_v18 = vsel %vm1386_vm9, %v1377_v7, %v1395_v10 }
 0x292   : > { %v1413_v36 = vrot.slane %v1404_v18, 7  ;;  %v1440_v12 = vrot.slane %v1404_v18, 1  ;;  %3472 = vmatmul.mubr.msk.f32.gmra.mxu1 %vm678_vm5, %v1404_v18 }
 0x293   : > { %3474 = vmatprep.mubr.msk.f32.mxu1 %vm3743_vm1, %v3742_v1  ;;  %vm1387_vm10 = vcmp.ge.f32.partialorder %v1378_v52, 0.0  ;;  %v1396_v29 = vmul.f32 0.2, %v1378_v52 }
 0x294   : > { %v1443_v46 = vsel %vm623_vm4, %v1439_v26, %v1440_v12  ;;  %v1416_v23 = vsel %vm541_vm3, %v1412_v39, %v1413_v36 }
 0x295   : > { %v1405_v24 = vsel %vm1387_vm10, %v1378_v52, %v1396_v29 }
 0x296   : > { %v1414_v25 = vrot.slane %v1405_v24, 7  ;;  %v1441_v16 = vrot.slane %v1405_v24, 1  ;;  %3475 = vmatmul.mubr.msk.f32.gmra.mxu1 %vm678_vm5, %v1405_v24 }
 0x297   : > { %3508 = vmatprep.mubr.msk.f32.mxu1 %vm3743_vm1, %v3742_v1 }
 0x298   : > { %v1423_v60 = vsel %vm541_vm3, %v1414_v25, %v1406_v32  ;;  %v1442_v11 = vsel %vm623_vm4, %v1440_v12, %v1441_v16  ;;  %v1415_v27 = vsel %vm541_vm3, %v1413_v36, %v1414_v25  ;;  %v1450_v28 = vsel %vm623_vm4, %v1441_v16, %v1433_v33  ;;  %v1984_v32 = vld [vmem:[%s4977_s2 + $0x48] sm:$0xff] }
 0x299   : > { %v1424_v30 = vsel %vm842_vm12, 0.0, %v1423_v60  ;;  %v1459_v21 = vsel %vm886_vm13, 0.0, %v1450_v28 }
 0x29a   : > { %3480 = vmatmul.mubr.msk.f32.vlgmr.msra.gmra.mxu0 %vm678_vm5, %v1424_v30  ;;  %3509 = vmatmul.mubr.msk.f32.vlgmr.msra.gmra.mxu1 %vm678_vm5, %v4464_v53 }
 0x29b   : > { %3482 = vmatprep.mubr.msk.f32.mxu0 %vm3743_vm1, %v3742_v1  ;;  %3511 = vmatprep.mubr.msk.f32.mxu1 %vm3743_vm1, %v3742_v1 }
 0x29c   : > { %3536 = vmatpush3.msra.mxu0 %v1984_v32 }
 0x29d   : > { %3540 = vmatprep.subr.mxu0 %v3742_v1 }
 0x29e   : > { %3483 = vmatmul.mubr.msk.f32.gmra.mxu0 %vm678_vm5, %v4470_v54  ;;  %3512 = vmatmul.mubr.msk.f32.gmra.mxu1 %vm678_vm5, %v4482_v19 }
 0x29f   : > { %3485 = vmatprep.mubr.msk.f32.mxu0 %vm3743_vm1, %v3742_v1  ;;  %3514 = vmatprep.mubr.msk.f32.mxu1 %vm3743_vm1, %v3742_v1 }
 0x2a2   : > { %3486 = vmatmul.mubr.msk.f32.gmra.mxu0 %vm678_vm5, %v4486_v41  ;;  %3515 = vmatmul.mubr.msk.f32.gmra.mxu1 %vm678_vm5, %v4498_v20 }
 0x2a3   : > { %3488 = vmatprep.mubr.msk.f32.mxu0 %vm3743_vm1, %v3742_v1  ;;  %3517 = vmatprep.mubr.msk.f32.mxu1 %vm3743_vm1, %v3742_v1 }
 0x2a6   : > { %3489 = vmatmul.mubr.msk.f32.gmra.mxu0 %vm678_vm5, %v4502_v43  ;;  %3518 = vmatmul.mubr.msk.f32.gmra.mxu1 %vm678_vm5, %v4514_v38 }
 0x2a7   : > { %3491 = vmatprep.mubr.msk.f32.mxu0 %vm3743_vm1, %v3742_v1  ;;  %3520 = vmatprep.mubr.msk.f32.mxu1 %vm3743_vm1, %v3742_v1 }
 0x2aa   : > { %3492 = vmatmul.mubr.msk.f32.gmra.mxu0 %vm678_vm5, %v4518_v45  ;;  %3521 = vmatmul.mubr.msk.f32.gmra.mxu1 %vm678_vm5, %v1445_v62 }
 0x2ab   : > { %3494 = vmatprep.mubr.msk.f32.mxu0 %vm3743_vm1, %v3742_v1  ;;  %3523 = vmatprep.mubr.msk.f32.mxu1 %vm3743_vm1, %v3742_v1 }
 0x2ae   : > { %3495 = vmatmul.mubr.msk.f32.gmra.mxu0 %vm678_vm5, %v1418_v50  ;;  %3524 = vmatmul.mubr.msk.f32.gmra.mxu1 %vm678_vm5, %v1444_v15 }
 0x2af   : > { %3497 = vmatprep.mubr.msk.f32.mxu0 %vm3743_vm1, %v3742_v1  ;;  %3526 = vmatprep.mubr.msk.f32.mxu1 %vm3743_vm1, %v3742_v1 }
 0x2b2   : > { %3498 = vmatmul.mubr.msk.f32.gmra.mxu0 %vm678_vm5, %v1417_v17  ;;  %3527 = vmatmul.mubr.msk.f32.gmra.mxu1 %vm678_vm5, %v1443_v46 }
 0x2b3   : > { %3500 = vmatprep.mubr.msk.f32.mxu0 %vm3743_vm1, %v3742_v1  ;;  %3529 = vmatprep.mubr.msk.f32.mxu1 %vm3743_vm1, %v3742_v1 }
 0x2b6   : > { %3501 = vmatmul.mubr.msk.f32.gmra.mxu0 %vm678_vm5, %v1416_v23  ;;  %3530 = vmatmul.mubr.msk.f32.gmra.mxu1 %vm678_vm5, %v1442_v11 }
 0x2b7   : > { %3503 = vmatprep.mubr.msk.f32.mxu0 %vm3743_vm1, %v3742_v1  ;;  %3532 = vmatprep.mubr.msk.f32.mxu1 %vm3743_vm1, %v3742_v1 }
 0x2ba   : > { %3504 = vmatmul.mubr.msk.f32.gmra.mxu0 %vm678_vm5, %v1415_v27  ;;  %3533 = vmatmul.mubr.msk.f32.gmra.mxu1 %vm678_vm5, %v1459_v21 }
 0x2bb   : > { %3537 = vmatprep.mubr.msk.f32.mxu0 %vm3743_vm1, %v3742_v1  ;;  %3577 = vmatprep.mubr.msk.f32.mxu1 %vm3743_vm1, %v3742_v1 }
 0x336   : > { %v1555_v33 = vpop.f32.mrf.mxu1 }
 0x338   : > { %v3452_v48 = vpop.f32.mrf.mxu1 }
 0x33a   : > { %v1560_v53 = vpop.f32.mrf.mxu1 }
 0x33c   : > { %v3455_v54 = vpop.f32.mrf.mxu1 }
 0x33e   : > { %v1565_v19 = vpop.f32.mrf.mxu1 }
 0x340   : > { %v3458_v41 = vpop.f32.mrf.mxu1 }
 0x342   : > { %v1570_v20 = vpop.f32.mrf.mxu1 }
 0x344   : > { %v3461_v43 = vpop.f32.mrf.mxu1 }
 0x346   : > { %v1575_v37 = vpop.f32.mrf.mxu1 }
 0x348   : > { %v3464_v42 = vpop.f32.mrf.mxu1 }
 0x34a   : > { %v1580_v44 = vpop.f32.mrf.mxu1 }
 0x34c   : > { %v3467_v49 = vpop.f32.mrf.mxu1 }
 0x34e   : > { %v4635_v38 = vpop.f32.mrf.mxu1 }
 0x350   : > { %v3470_v45 = vpop.f32.mrf.mxu1 }
 0x352   : > { %v4637_v51 = vpop.f32.mrf.mxu1 }
 0x354   : > { %v3473_v40 = vpop.f32.mrf.mxu1 }
 0x356   : > { %v4639_v34 = vpop.f32.mrf.mxu1 }
 0x358   : > { %v3476_v57 = vpop.f32.mrf.mxu1 }
 0x35a   : > { %v1692_v58 = vpop.f32.mrf.mxu0  ;;  %v1830_v56 = vpop.f32.mrf.mxu1 }
 0x35b   : > { %v1693_v14 = vadd.f32 %v1692_v58, %v1555_v33 }
 0x35c   : > { %v3481_v2 = vpop.f32.mrf.mxu0  ;;  %v3510_v5 = vpop.f32.mrf.mxu1 }
 0x35d   : > { %v1874_v6 = vadd.f32 %v1830_v56, %v1693_v14 }
 0x35e   : > { %v1697_v62 = vpop.f32.mrf.mxu0  ;;  %v1835_v50 = vpop.f32.mrf.mxu1 }
 0x35f   : > { %v1888_v7 = vadd.f32 %v4644_v0, %v1874_v6  ;;  %v1698_v59 = vadd.f32 %v1697_v62, %v1560_v53 }
 0x360   : > { %v3484_v4 = vpop.f32.mrf.mxu0  ;;  %v3513_v39 = vpop.f32.mrf.mxu1 }
 0x361   : > { %v1875_v26 = vadd.f32 %v1835_v50, %v1698_v59  ;;  %v4648_v15 = vadd.f32 %v1888_v7, %v4191_v61 }
 0x362   : > { %v1702_v8 = vpop.f32.mrf.mxu0  ;;  %v1840_v10 = vpop.f32.mrf.mxu1 }
 0x363   : > { %v1889_v17 = vadd.f32 %v4644_v0, %v1875_v26  ;;  %v1703_v52 = vadd.f32 %v1702_v8, %v1565_v19  ;;  %v1906_v24 = vrot.slane %v4648_v15, 7 }
 0x364   : > { %v3487_v18 = vpop.f32.mrf.mxu0  ;;  %v3516_v36 = vpop.f32.mrf.mxu1 }
 0x365   : > { %v4652_v12 = vadd.f32 %v1889_v17, %v4181_v47  ;;  %v1876_v29 = vadd.f32 %v1840_v10, %v1703_v52 }
 0x366   : > { %v1707_v46 = vpop.f32.mrf.mxu0  ;;  %v1845_v23 = vpop.f32.mrf.mxu1 }
 0x367   : > { %v1907_v25 = vrot.slane %v4652_v12, 7  ;;  %v1890_v16 = vadd.f32 %v4644_v0, %v1876_v29  ;;  %v1708_v60 = vadd.f32 %v1707_v46, %v1570_v20  ;;  %v1934_v30 = vrot.slane %v4652_v12, 1 }
 0x368   : > { %v3490_v61 = vpop.f32.mrf.mxu0  ;;  %v3519_v11 = vpop.f32.mrf.mxu1 }
 0x369   : > { %v1922_v27 = vsel %vm541_vm3, %v1906_v24, %v1907_v25  ;;  %v1899_v47 = vadd.f32 %v1890_v16, %v4193_v63  ;;  %v1877_v28 = vadd.f32 %v1845_v23, %v1708_v60 }
 0x36a   : > { %v1712_v21 = vpop.f32.mrf.mxu0  ;;  %v1850_v32 = vpop.f32.mrf.mxu1  ;;  %v1925_v19 = vmax.f32 %v1922_v27, %v4652_v12 }
 0x36b   : > { %v1908_v33 = vrot.slane %v1899_v47, 7  ;;  %v1935_v48 = vrot.slane %v1899_v47, 1  ;;  %v1891_v53 = vadd.f32 %v4644_v0, %v1877_v28  ;;  %v1713_v54 = vadd.f32 %v1712_v21, %v1575_v37 }
 0x36c   : > { %v3493_v41 = vpop.f32.mrf.mxu0  ;;  %v3522_v20 = vpop.f32.mrf.mxu1 }
 0x36d   : > { %v1921_v43 = vsel %vm541_vm3, %v1907_v25, %v1908_v33  ;;  %v1948_v63 = vsel %vm623_vm4, %v1934_v30, %v1935_v48  ;;  %v1900_v42 = vadd.f32 %v1891_v53, %v4209_v9  ;;  %v1878_v49 = vadd.f32 %v1850_v32, %v1713_v54 }
 0x36e   : > { %v1952_v45 = vmax.f32 %v1925_v19, %v1948_v63  ;;  %v1717_v40 = vpop.f32.mrf.mxu0  ;;  %v1855_v57 = vpop.f32.mrf.mxu1  ;;  %v1926_v2 = vmax.f32 %v1921_v43, %v1899_v47 }
 0x36f   : > { %v1909_v58 = vrot.slane %v1900_v42, 7  ;;  %v1936_v37 = vrot.slane %v1900_v42, 1  ;;  %v1892_v56 = vadd.f32 %v4644_v0, %v1878_v49  ;;  %v1718_v14 = vadd.f32 %v1717_v40, %v1580_v44 }
 0x370   : > { %1961 = vst.msk [vmem:[#allocation2 + $0x8] sm:$0xff] %vm678_vm5, %v1952_v45  ;;  %v3496_v5 = vpop.f32.mrf.mxu0  ;;  %v3525_v6 = vpop.f32.mrf.mxu1 }
 0x371   : > { %v1920_v62 = vsel %vm541_vm3, %v1908_v33, %v1909_v58  ;;  %v1947_v9 = vsel %vm623_vm4, %v1935_v48, %v1936_v37  ;;  %v1901_v50 = vadd.f32 %v1892_v56, %v4075_v55  ;;  %v1879_v7 = vadd.f32 %v1855_v57, %v1718_v14 }
 0x372   : > { %v1953_v59 = vmax.f32 %v1926_v2, %v1947_v9  ;;  %v1722_v4 = vpop.f32.mrf.mxu0  ;;  %v1860_v39 = vpop.f32.mrf.mxu1  ;;  %v1927_v17 = vmax.f32 %v1920_v62, %v1900_v42 }
 0x373   : > { %v1910_v26 = vrot.slane %v1901_v50, 7  ;;  %v1937_v8 = vrot.slane %v1901_v50, 1  ;;  %v1893_v44 = vadd.f32 %v4644_v0, %v1879_v7  ;;  %v1723_v10 = vadd.f32 %v1722_v4, %v4635_v38 }
 0x374   : > { %1962 = vst.msk [vmem:[#allocation2 + $0x10] sm:$0xff] %vm678_vm5, %v1953_v59  ;;  %v3499_v52 = vpop.f32.mrf.mxu0  ;;  %v3528_v18 = vpop.f32.mrf.mxu1 }
 0x375   : > { %v1919_v36 = vsel %vm541_vm3, %v1909_v58, %v1910_v26  ;;  %v1946_v55 = vsel %vm623_vm4, %v1936_v37, %v1937_v8  ;;  %v1902_v29 = vadd.f32 %v1893_v44, %v4106_v22  ;;  %v1880_v46 = vadd.f32 %v1860_v39, %v1723_v10 }
 0x376   : > { %v1954_v23 = vmax.f32 %v1927_v17, %v1946_v55  ;;  %v1727_v25 = vpop.f32.mrf.mxu0  ;;  %v1865_v16 = vpop.f32.mrf.mxu1  ;;  %v1928_v27 = vmax.f32 %v1919_v36, %v1901_v50  ;;  %v1933_v50 = vrot.slane %v4648_v15, 1 }
 0x377   : > { %v1911_v60 = vrot.slane %v1902_v29, 7  ;;  %v1938_v61 = vrot.slane %v1902_v29, 1  ;;  %v1894_v38 = vadd.f32 %v4644_v0, %v1880_v46  ;;  %v1728_v11 = vadd.f32 %v1727_v25, %v4637_v51 }
 0x378   : > { %1963 = vst.msk [vmem:[#allocation2 + $0x18] sm:$0xff] %vm678_vm5, %v1954_v23  ;;  %v3502_v47 = vpop.f32.mrf.mxu0  ;;  %v3531_v28 = vpop.f32.mrf.mxu1 }
 0x379   : > { %v1918_v21 = vsel %vm541_vm3, %v1910_v26, %v1911_v60  ;;  %v1945_v22 = vsel %vm623_vm4, %v1937_v8, %v1938_v61  ;;  %v1903_v32 = vadd.f32 %v1894_v38, %v4146_v13  ;;  %v1881_v33 = vadd.f32 %v1865_v16, %v1728_v11  ;;  %v1985_v38 = vld [vmem:[%s4976_s1 + $0x8] sm:$0x1] }
 0x37a   : > { %v1955_v48 = vmax.f32 %v1928_v27, %v1945_v22  ;;  %v1732_v53 = vpop.f32.mrf.mxu0  ;;  %v1870_v54 = vpop.f32.mrf.mxu1  ;;  %v1929_v43 = vmax.f32 %v1918_v21, %v1902_v29  ;;  %v1949_v26 = vsel %vm623_vm4, %v1933_v50, %v1934_v30 }
 0x37b   : > { %v1912_v19 = vrot.slane %v1903_v32, 7  ;;  %v1939_v41 = vrot.slane %v1903_v32, 1  ;;  %v1895_v51 = vadd.f32 %v4644_v0, %v1881_v33  ;;  %v1733_v20 = vadd.f32 %v1732_v53, %v4639_v34 }
 0x37c   : > { %1964 = vst.msk [vmem:[#allocation2 + $0x20] sm:$0xff] %vm678_vm5, %v1955_v48  ;;  %v3505_v63 = vpop.f32.mrf.mxu0  ;;  %v3534_v42 = vpop.f32.mrf.mxu1  ;;  %v2066_v33 = vsub.s32 0, %v3950_v35 }
 0x37d   : > { %v1917_v49 = vsel %vm541_vm3, %v1911_v60, %v1912_v19  ;;  %v1944_v13 = vsel %vm623_vm4, %v1938_v61, %v1939_v41  ;;  %v1904_v45 = vadd.f32 %v1895_v51, %v4168_v31  ;;  %v1882_v40 = vadd.f32 %v1870_v54, %v1733_v20  ;;  %v2121_v61 = vld [vmem:[%s4977_s2 + $0x58] sm:$0xff]  ;;  %v3115_v51 = vld [vmem:[%s4976_s1 + $0x9] ss:$0 sm:$0xff]  ;;  %v3116_v42 = vld [vmem:[%s4976_s1 + $0xa] ss:$0 sm:$0xff] }
 0x37e   : > { %v1956_v57 = vmax.f32 %v1929_v43, %v1944_v13  ;;  %v1930_v34 = vmax.f32 %v1917_v49, %v1903_v32 }
 0x37f   : > { %v1913_v58 = vrot.slane %v1904_v45, 7  ;;  %v1940_v37 = vrot.slane %v1904_v45, 1  ;;  %v1896_v56 = vadd.f32 %v4644_v0, %v1882_v40 }
 0x380   : > { %1965 = vst.msk [vmem:[#allocation2 + $0x28] sm:$0xff] %vm678_vm5, %v1956_v57 }
 0x381   : > { %v1916_v14 = vsel %vm541_vm3, %v1912_v19, %v1913_v58  ;;  %v1943_v2 = vsel %vm623_vm4, %v1939_v41, %v1940_v37  ;;  %v1905_v5 = vadd.f32 %v1896_v56, %v4201_v3  ;;  %v2120_v56 = vld [vmem:[%s4977_s2 + $0x50] sm:$0xff] }
 0x382   : > { %v1957_v6 = vmax.f32 %v1930_v34, %v1943_v2  ;;  %v1931_v9 = vmax.f32 %v1916_v14, %v1904_v45 }
 0x383   : > { %v1914_v62 = vrot.slane %v1905_v5, 7  ;;  %v1941_v31 = vrot.slane %v1905_v5, 1 }
 0x384   : > { %1966 = vst.msk [vmem:[#allocation2 + $0x30] sm:$0xff] %vm678_vm5, %v1957_v6 }
 0x385   : > { %v1915_v0 = vsel %vm541_vm3, %v1913_v58, %v1914_v62  ;;  %v1923_v7 = vsel %vm541_vm3, %v1914_v62, %v1906_v24  ;;  %v1942_v59 = vsel %vm623_vm4, %v1940_v37, %v1941_v31  ;;  %v1950_v8 = vsel %vm623_vm4, %v1941_v31, %v1933_v50  ;;  %v2300_v50 = vld [vmem:[%s4977_s2 + $0x60] sm:$0xff] }
 0x386   : > { %v1924_v3 = vmax.f32 %v1923_v7, %v4648_v15  ;;  %v1932_v4 = vmax.f32 %v1915_v0, %v1905_v5  ;;  %v1958_v39 = vmax.f32 %v1931_v9, %v1942_v59 }
 0x387   : > { %v1970_v24 = vld [vmem:[#allocation2 + $0x19] ss:$3 sm:$0xff] }
 0x388   : > { %v1951_v44 = vmax.f32 %v1924_v3, %v1949_v26  ;;  %v1959_v10 = vmax.f32 %v1932_v4, %v1950_v8  ;;  %1967 = vst.msk [vmem:[#allocation2 + $0x38] sm:$0xff] %vm678_vm5, %v1958_v39  ;;  %v1973_v12 = vsel %vm678_vm5, %v1970_v24, 0.0 }
 0x38a   : > { %1960 = vst.msk [vmem:[#allocation2] sm:$0xff] %vm678_vm5, %v1951_v44  ;;  %1968 = vst.msk [vmem:[#allocation2 + $0x40] sm:$0xff] %vm678_vm5, %v1959_v10  ;;  %v4799_v44 = vadd.s32 16, %v3950_v35 }
 0x38c   : > { %vm2110_vm15 = vcmp.eq.s32.totalorder %v4799_v44, 23  ;;  %v2858_v44 = vld [vmem:[%s4977_s2 + $0xa8] sm:$0xff] }
 0x391   : > { %v1969_v15 = vld [vmem:[#allocation2 + $0x1] ss:$3 sm:$0xff]  ;;  %v1971_v17 = vld [vmem:[#allocation2 + $0x31] ss:$3 sm:$0xff] }
 0x392   : > { %v1972_v52 = vsel %vm678_vm5, %v1969_v15, 0.0  ;;  %v1975_v30 = vsel %vm678_vm5, %v1971_v17, 0.0 }
 0x393   : > { %v1974_v18 = vadd.f32 %v1973_v12, %v1972_v52  ;;  %v2446_v52 = vld [vmem:[%s4977_s2 + $0x78] sm:$0xff]  ;;  %v2445_v12 = vld [vmem:[%s4977_s2 + $0x70] sm:$0xff] }
 0x395   : > { %v1976_v36 = vadd.f32 %v1975_v30, %v1974_v18  ;;  %v2444_v18 = vld [vmem:[%s4977_s2 + $0x68] sm:$0xff] }
 0x397   : > { %v1977_v55 = vrot.slane %v1976_v36, 4 }
 0x399   : > { %v1978_v29 = vadd.f32 %v1977_v55, %v1976_v36 }
 0x39b   : > { %v1979_v46 = vrot.slane %v1978_v29, 2 }
 0x39d   : > { %v1980_v23 = vadd.f32 %v1979_v46, %v1978_v29 }
 0x39f   : > { %v1981_v25 = vrot.slane %v1980_v23, 1 }
 0x3a1   : > { %v1982_v16 = vadd.f32 %v1981_v25, %v1980_v23 }
 0x3a3   : > { %v1983_v60 = vmul.f32 0.041666668, %v1982_v16 }
 0x3a5   : > { %3538 = vmatmul.mubr.msk.f32.vlgmr.msra.gmra.mxu0 %vm678_vm5, %v1983_v60 }
 0x3a6   : > { %3542 = vmatprep.mubr.msk.f32.mxu0 %vm3743_vm1, %v3742_v1  ;;  %3541 = vmatpush3.msra.mxu0 %v2121_v61 }
 0x3a7   : > { %3551 = vmatprep.subr.mxu0 %v3742_v1 }
 0x465   : > { %v2055_v11 = vpop.f32.mrf.mxu0 }
 0x466   : > { %v2056_v27 = vadd.f32 %v2055_v11, %v1985_v38 }
 0x467   : > { %v3539_v47 = vpop.f32.mrf.mxu0 }
 0x468   : > { %v2059_v28 = vsub.f32 0.0, %v2056_v27 }
 0x46a   : > { %v2060_v21 = vmul.f32 1.442695, %v2059_v28  ;;  %v3126_v28 = vld [vmem:[%s4976_s1 + $0xb] ss:$0 sm:$0xff] }
 0x46c   : > { %3672 = vpow2.f32 %v2060_v21 }
 0x479   : > { %v3673_v22 = vpop.eup %3672 }
 0x47a   : > { %v2062_v32 = vadd.f32 1.0, %v3673_v22  ;;  %v3127_v22 = vld [vmem:[%s4976_s1 + $0xc] ss:$0 sm:$0xff] }
 0x47c   : > { %3674 = vrcp.f32 %v2062_v32 }
 0x489   : > { %v3675_v48 = vpop.eup %3674 }
 0x48a   : > { %v2067_v53 = vrot.slane %v3675_v48, %v2066_v33 }
 0x48c   : > { %v2068_v54 = vmul.f32 %v2067_v53, %v1969_v15  ;;  %v2069_v19 = vmul.f32 %v2067_v53, %v1970_v24  ;;  %v2070_v41 = vmul.f32 %v2067_v53, %v1971_v17  ;;  %v2447_v17 = vld [vmem:[%s4977_s2 + $0x80] sm:$0xff] }
 0x48d   : > { %3574 = vmatpush3.msra.mxu1 %v2447_v17 }
 0x48e   : > { %v4749_v20 = vadd.f32 %v2068_v54, %v2067_v53  ;;  %v4751_v43 = vadd.f32 %v2069_v19, %v2067_v53  ;;  %v4753_v63 = vadd.f32 %v2070_v41, %v2067_v53  ;;  %3575 = vmatprep.subr.mxu1 %v3742_v1  ;;  %v3128_v54 = vld [vmem:[%s4976_s1 + $0xd] ss:$0 sm:$0xff] }
 0x48f   : > { %3576 = vmatpush3.msra.mxu1 %v2446_v52 }
 0x490   : > { %v2079_v49 = vmul.f32 %v3115_v51, %v4749_v20  ;;  %v2080_v13 = vmul.f32 %v3115_v51, %v4751_v43  ;;  %v2081_v45 = vmul.f32 %v3115_v51, %v4753_v63  ;;  %3599 = vmatprep.subr.mxu1 %v3742_v1 }
 0x492   : > { %v2087_v40 = vadd.f32 %v3116_v42, %v2079_v49  ;;  %v2088_v57 = vadd.f32 %v3116_v42, %v2080_v13  ;;  %v2089_v58 = vadd.f32 %v3116_v42, %v2081_v45 }
 0x494   : > { %vm2090_vm11 = vcmp.ge.f32.partialorder %v2087_v40, 0.0  ;;  %v2093_v37 = vmul.f32 0.2, %v2087_v40  ;;  %vm2092_vm13 = vcmp.ge.f32.partialorder %v2089_v58, 0.0  ;;  %v2095_v34 = vmul.f32 0.2, %v2089_v58 }
 0x495   : > { %v2094_v2 = vmul.f32 0.2, %v2088_v57  ;;  %vm2091_vm14 = vcmp.ge.f32.partialorder %v2088_v57, 0.0 }
 0x496   : > { %v2096_v14 = vsel %vm2090_vm11, %v2087_v40, %v2093_v37  ;;  %v2098_v5 = vsel %vm2092_vm13, %v2089_v58, %v2095_v34  ;;  %v2628_v34 = vld [vmem:[%s4977_s2 + $0x90] sm:$0xff] }
 0x497   : > { %3543 = vmatmul.mubr.msk.f32.vlgmr.msra.gmra.mxu0 %vm678_vm5, %v2096_v14  ;;  %v2097_v6 = vsel %vm2091_vm14, %v2088_v57, %v2094_v2  ;;  %v2099_v62 = vrot.slane %v2096_v14, 7  ;;  %v2101_v31 = vrot.slane %v2098_v5, 7  ;;  %v2111_v3 = vrot.slane %v2096_v14, 1 }
 0x498   : > { %3552 = vmatpush3.msra.mxu0 %v2120_v56  ;;  %3545 = vmatprep.mubr.msk.f32.mxu0 %vm3743_vm1, %v3742_v1  ;;  %v2100_v0 = vrot.slane %v2097_v6, 7  ;;  %v2112_v4 = vrot.slane %v2097_v6, 1  ;;  %v2113_v26 = vrot.slane %v2098_v5, 1 }
 0x499   : > { %3562 = vmatprep.subr.mxu0 %v3742_v1  ;;  %v2104_v9 = vsel %vm541_vm3, %v2101_v31, %v2099_v62 }
 0x49a   : > { %v2105_v7 = vsel %vm842_vm12, 0.0, %v2104_v9  ;;  %v2103_v59 = vsel %vm541_vm3, %v2099_v62, %v2100_v0  ;;  %v2102_v39 = vsel %vm541_vm3, %v2100_v0, %v2101_v31  ;;  %v2115_v8 = vsel %vm623_vm4, %v2111_v3, %v2112_v4 }
 0x49b   : > { %3546 = vmatmul.mubr.msk.f32.gmra.mxu0 %vm678_vm5, %v2097_v6  ;;  %v2114_v10 = vsel %vm623_vm4, %v2112_v4, %v2113_v26  ;;  %v2116_v24 = vsel %vm623_vm4, %v2113_v26, %v2111_v3  ;;  %v2627_v6 = vld [vmem:[%s4977_s2 + $0x88] sm:$0xff] }
 0x49c   : > { %3548 = vmatprep.mubr.msk.f32.mxu0 %vm3743_vm1, %v3742_v1  ;;  %v2119_v15 = vsel %vm2110_vm15, 0.0, %v2116_v24 }
 0x49f   : > { %3549 = vmatmul.mubr.msk.f32.gmra.mxu0 %vm678_vm5, %v2098_v5 }
 0x4a0   : > { %3553 = vmatprep.mubr.msk.f32.mxu0 %vm3743_vm1, %v3742_v1 }
 0x4a3   : > { %3554 = vmatmul.mubr.msk.f32.vlgmr.msra.gmra.mxu0 %vm678_vm5, %v2105_v7 }
 0x4a4   : > { %3563 = vmatpush3.msra.mxu0 %v2300_v50  ;;  %3556 = vmatprep.mubr.msk.f32.mxu0 %vm3743_vm1, %v3742_v1 }
 0x4a5   : > { %3586 = vmatprep.subr.mxu0 %v3742_v1 }
 0x4a7   : > { %3557 = vmatmul.mubr.msk.f32.gmra.mxu0 %vm678_vm5, %v2103_v59 }
 0x4a8   : > { %3559 = vmatprep.mubr.msk.f32.mxu0 %vm3743_vm1, %v3742_v1 }
 0x4ab   : > { %3560 = vmatmul.mubr.msk.f32.gmra.mxu0 %vm678_vm5, %v2102_v39 }
 0x4ac   : > { %3564 = vmatprep.mubr.msk.f32.mxu0 %vm3743_vm1, %v3742_v1 }
 0x4af   : > { %3565 = vmatmul.mubr.msk.f32.vlgmr.msra.gmra.mxu0 %vm678_vm5, %v2115_v8  ;;  %v2729_v8 = vld [vmem:[%s4977_s2 + $0x98] sm:$0xff] }
 0x4b0   : > { %3567 = vmatprep.mubr.msk.f32.mxu0 %vm3743_vm1, %v3742_v1  ;;  %3587 = vmatpush3.msra.mxu0 %v2445_v12 }
 0x4b1   : > { %3588 = vmatprep.subr.mxu0 %v3742_v1 }
 0x4b2   : > { %3589 = vmatpush3.msra.mxu0 %v2444_v18 }
 0x4b3   : > { %3568 = vmatmul.mubr.msk.f32.gmra.mxu0 %vm678_vm5, %v2114_v10  ;;  %3612 = vmatprep.subr.mxu0 %v3742_v1 }
 0x4b4   : > { %3570 = vmatprep.mubr.msk.f32.mxu0 %vm3743_vm1, %v3742_v1 }
 0x4b7   : > { %3571 = vmatmul.mubr.msk.f32.gmra.mxu0 %vm678_vm5, %v2119_v15 }
 0x4b8   : > { %3590 = vmatprep.mubr.msk.f32.mxu0 %vm3743_vm1, %v3742_v1 }
 0x557   : > { %v2197_v30 = vpop.f32.mrf.mxu0 }
 0x559   : > { %v3544_v36 = vpop.f32.mrf.mxu0 }
 0x55b   : > { %v2202_v55 = vpop.f32.mrf.mxu0 }
 0x55d   : > { %v3547_v29 = vpop.f32.mrf.mxu0 }
 0x55f   : > { %v2207_v46 = vpop.f32.mrf.mxu0 }
 0x561   : > { %v3550_v23 = vpop.f32.mrf.mxu0 }
 0x563   : > { %v2286_v25 = vpop.f32.mrf.mxu0 }
 0x564   : > { %v2287_v27 = vadd.f32 %v2286_v25, %v2197_v30 }
 0x565   : > { %v3555_v16 = vpop.f32.mrf.mxu0 }
 0x567   : > { %v2291_v60 = vpop.f32.mrf.mxu0 }
 0x568   : > { %v2292_v48 = vadd.f32 %v2291_v60, %v2202_v55 }
 0x569   : > { %v3558_v61 = vpop.f32.mrf.mxu0 }
 0x56b   : > { %v2296_v38 = vpop.f32.mrf.mxu0 }
 0x56c   : > { %v2297_v49 = vadd.f32 %v2296_v38, %v2207_v46 }
 0x56d   : > { %v3561_v11 = vpop.f32.mrf.mxu0 }
 0x56f   : > { %v2376_v47 = vpop.f32.mrf.mxu0 }
 0x570   : > { %v2390_v21 = vadd.f32 %v2376_v47, %v2287_v27 }
 0x571   : > { %v3566_v32 = vpop.f32.mrf.mxu0 }
 0x572   : > { %v2398_v53 = vadd.f32 %v3126_v28, %v2390_v21 }
 0x573   : > { %v2381_v19 = vpop.f32.mrf.mxu0 }
 0x574   : > { %v2406_v41 = vmul.f32 %v3127_v22, %v2398_v53  ;;  %v2391_v51 = vadd.f32 %v2381_v19, %v2292_v48  ;;  %v3139_v53 = vld [vmem:[%s4976_s1 + $0xf] ss:$0 sm:$0xff]  ;;  %v3138_v19 = vld [vmem:[%s4976_s1 + $0xe] ss:$0 sm:$0xff] }
 0x575   : > { %v3569_v42 = vpop.f32.mrf.mxu0 }
 0x576   : > { %v2414_v13 = vadd.f32 %v3128_v54, %v2406_v41  ;;  %v2399_v45 = vadd.f32 %v3126_v28, %v2391_v51 }
 0x577   : > { %v2386_v40 = vpop.f32.mrf.mxu0 }
 0x578   : > { %v2420_v57 = vmul.f32 0.2, %v2414_v13  ;;  %v2407_v58 = vmul.f32 %v3127_v22, %v2399_v45  ;;  %v2392_v37 = vadd.f32 %v2386_v40, %v2297_v49  ;;  %vm2417_vm2 = vcmp.ge.f32.partialorder %v2414_v13, 0.0 }
 0x579   : > { %v3572_v56 = vpop.f32.mrf.mxu0 }
 0x57a   : > { %v2415_v14 = vadd.f32 %v3128_v54, %v2407_v58  ;;  %v2400_v2 = vadd.f32 %v3126_v28, %v2392_v37  ;;  %v2423_v5 = vsel %vm2417_vm2, %v2414_v13, %v2420_v57 }
 0x57b   : > { %3578 = vmatmul.mubr.msk.f32.vlgmr.msra.gmra.mxu1 %vm2448_vm0, %v2423_v5  ;;  %v2426_v3 = vrot.slane %v2423_v5, 7  ;;  %v2435_v39 = vrot.slane %v2423_v5, 1 }
 0x57c   : > { %v2408_v62 = vmul.f32 %v3127_v22, %v2400_v2  ;;  %3580 = vmatprep.mubr.msk.f32.mxu1 %vm3743_vm1, %v3742_v1  ;;  %vm2418_vm6 = vcmp.ge.f32.partialorder %v2415_v14, 0.0  ;;  %v2421_v31 = vmul.f32 0.2, %v2415_v14  ;;  %3600 = vmatpush3.msra.mxu1 %v2628_v34 }
 0x57d   : > { %3601 = vmatprep.subr.mxu1 %v3742_v1 }
 0x57e   : > { %v2416_v9 = vadd.f32 %v3128_v54, %v2408_v62  ;;  %v2424_v50 = vsel %vm2418_vm6, %v2415_v14, %v2421_v31  ;;  %3602 = vmatpush3.msra.mxu1 %v2627_v6 }
 0x57f   : > { %3581 = vmatmul.mubr.msk.f32.gmra.mxu1 %vm2448_vm0, %v2424_v50  ;;  %3623 = vmatprep.subr.mxu1 %v3742_v1  ;;  %v2436_v7 = vrot.slane %v2424_v50, 1  ;;  %v2427_v10 = vrot.slane %v2424_v50, 7 }
 0x580   : > { %3583 = vmatprep.mubr.msk.f32.mxu1 %vm3743_vm1, %v3742_v1  ;;  %vm2419_vm7 = vcmp.ge.f32.partialorder %v2416_v9, 0.0  ;;  %v2422_v0 = vmul.f32 0.2, %v2416_v9 }
 0x581   : > { %v2439_v17 = vsel %vm623_vm4, %v2435_v39, %v2436_v7  ;;  %v2430_v52 = vsel %vm541_vm3, %v2426_v3, %v2427_v10 }
 0x582   : > { %v2425_v59 = vsel %vm2419_vm7, %v2416_v9, %v2422_v0 }
 0x583   : > { %v2428_v4 = vrot.slane %v2425_v59, 7  ;;  %3584 = vmatmul.mubr.msk.f32.gmra.mxu1 %vm2448_vm0, %v2425_v59  ;;  %v2437_v24 = vrot.slane %v2425_v59, 1 }
 0x584   : > { %3603 = vmatprep.mubr.msk.f32.mxu1 %vm3743_vm1, %v3742_v1 }
 0x585   : > { %v2431_v26 = vsel %vm541_vm3, %v2428_v4, %v2426_v3  ;;  %v2438_v12 = vsel %vm623_vm4, %v2436_v7, %v2437_v24  ;;  %v2440_v18 = vsel %vm623_vm4, %v2437_v24, %v2435_v39  ;;  %v2429_v30 = vsel %vm541_vm3, %v2427_v10, %v2428_v4 }
 0x586   : > { %v2432_v15 = vsel %vm842_vm12, 0.0, %v2431_v26  ;;  %v2443_v36 = vsel %vm2110_vm15, 0.0, %v2440_v18 }
 0x587   : > { %3591 = vmatmul.mubr.msk.f32.vlgmr.msra.gmra.mxu0 %vm2448_vm0, %v2432_v15  ;;  %3604 = vmatmul.mubr.msk.f32.vlgmr.msra.gmra.mxu1 %vm2448_vm0, %v2439_v17 }
 0x588   : > { %3613 = vmatpush3.msra.mxu0 %v2729_v8  ;;  %3593 = vmatprep.mubr.msk.f32.mxu0 %vm3743_vm1, %v3742_v1 }
 0x589   : > { %3606 = vmatprep.mubr.msk.f32.mxu1 %vm3743_vm1, %v3742_v1  ;;  %3624 = vmatpush3.msra.mxu1 %v2858_v44 }
 0x58a   : > { %3625 = vmatprep.subr.mxu1 %v3742_v1 }
 0x58b   : > { %3594 = vmatmul.mubr.msk.f32.gmra.mxu0 %vm2448_vm0, %v2430_v52  ;;  %3607 = vmatmul.mubr.msk.f32.gmra.mxu1 %vm2448_vm0, %v2438_v12 }
 0x58c   : > { %3596 = vmatprep.mubr.msk.f32.mxu0 %vm3743_vm1, %v3742_v1  ;;  %3609 = vmatprep.mubr.msk.f32.mxu1 %vm3743_vm1, %v3742_v1 }
 0x58f   : > { %3597 = vmatmul.mubr.msk.f32.gmra.mxu0 %vm2448_vm0, %v2429_v30  ;;  %3610 = vmatmul.mubr.msk.f32.gmra.mxu1 %vm2448_vm0, %v2443_v36 }
 0x590   : > { %3614 = vmatprep.mubr.msk.f32.mxu0 %vm3743_vm1, %v3742_v1  ;;  %3627 = vmatprep.mubr.msk.f32.mxu1 %vm3743_vm1, %v3742_v1 }
 0x593   : > { %3615 = vmatmul.mubr.msk.f32.vlgmr.msra.gmra.mxu0 %vm678_vm5, %v4749_v20  ;;  %v2857_v20 = vld [vmem:[%s4977_s2 + $0xa0] sm:$0xff] }
 0x594   : > { %3617 = vmatprep.mubr.msk.f32.mxu0 %vm3743_vm1, %v3742_v1  ;;  %3626 = vmatpush3.msra.mxu1 %v2857_v20 }
 0x597   : > { %3618 = vmatmul.mubr.msk.f32.gmra.mxu0 %vm678_vm5, %v4751_v43 }
 0x598   : > { %3620 = vmatprep.mubr.msk.f32.mxu0 %vm3743_vm1, %v3742_v1 }
 0x59b   : > { %3621 = vmatmul.mubr.msk.f32.gmra.mxu0 %vm678_vm5, %v4753_v63 }
 0x63b   : > { %v2524_v55 = vpop.f32.mrf.mxu1 }
 0x63d   : > { %v3579_v43 = vpop.f32.mrf.mxu1 }
 0x63f   : > { %v2529_v29 = vpop.f32.mrf.mxu1 }
 0x641   : > { %v3582_v46 = vpop.f32.mrf.mxu1 }
 0x643   : > { %v2534_v23 = vpop.f32.mrf.mxu1 }
 0x645   : > { %v3585_v25 = vpop.f32.mrf.mxu1 }
 0x647   : > { %v2613_v16 = vpop.f32.mrf.mxu0  ;;  %v2704_v63 = vpop.f32.mrf.mxu1 }
 0x648   : > { %v2614_v28 = vadd.f32 %v2613_v16, %v2524_v55  ;;  %v2859_v16 = vld [vmem:[%s4976_s1 + $0x10] sm:$0x1] }
 0x649   : > { %v3592_v60 = vpop.f32.mrf.mxu0  ;;  %v3605_v61 = vpop.f32.mrf.mxu1 }
 0x64a   : > { %v2718_v54 = vadd.f32 %v2704_v63, %v2614_v28 }
 0x64b   : > { %v2618_v38 = vpop.f32.mrf.mxu0  ;;  %v2709_v11 = vpop.f32.mrf.mxu1 }
 0x64c   : > { %v2619_v32 = vadd.f32 %v2618_v38, %v2529_v29  ;;  %v2726_v45 = vadd.f32 %v3138_v19, %v2718_v54 }
 0x64d   : > { %v3595_v27 = vpop.f32.mrf.mxu0  ;;  %v3608_v47 = vpop.f32.mrf.mxu1 }
 0x64e   : > { %v2719_v51 = vadd.f32 %v2709_v11, %v2619_v32 }
 0x64f   : > { %v2623_v21 = vpop.f32.mrf.mxu0  ;;  %v2714_v22 = vpop.f32.mrf.mxu1 }
 0x650   : > { %v2624_v42 = vadd.f32 %v2623_v21, %v2534_v23  ;;  %v2727_v57 = vadd.f32 %v3138_v19, %v2719_v51 }
 0x651   : > { %v3598_v1 = vpop.f32.mrf.mxu0  ;;  %v3611_v48 = vpop.f32.mrf.mxu1 }
 0x652   : > { %v2720_v58 = vadd.f32 %v2714_v22, %v2624_v42 }
 0x653   : > { %v2810_v41 = vpop.f32.mrf.mxu0 }
 0x654   : > { %v2811_v49 = vadd.f32 %v3139_v53, %v2810_v41  ;;  %v2728_v5 = vadd.f32 %v3138_v19, %v2720_v58 }
 0x655   : > { %v3616_v13 = vpop.f32.mrf.mxu0 }
 0x656   : > { %v2824_v37 = vadd.f32 %v2811_v49, %v2726_v45 }
 0x657   : > { %v2815_v40 = vpop.f32.mrf.mxu0 }
 0x658   : > { %v2816_v56 = vadd.f32 %v3139_v53, %v2815_v40  ;;  %v2827_v6 = vrot.slane %v2824_v37, 7  ;;  %v2836_v39 = vrot.slane %v2824_v37, 1 }
 0x659   : > { %v3619_v34 = vpop.f32.mrf.mxu0 }
 0x65a   : > { %v2825_v14 = vadd.f32 %v2816_v56, %v2727_v57 }
 0x65b   : > { %v2820_v2 = vpop.f32.mrf.mxu0 }
 0x65c   : > { %v2828_v62 = vrot.slane %v2825_v14, 7  ;;  %v2821_v31 = vadd.f32 %v3139_v53, %v2820_v2  ;;  %v2837_v7 = vrot.slane %v2825_v14, 1 }
 0x65d   : > { %v3622_v9 = vpop.f32.mrf.mxu0 }
 0x65e   : > { %v2831_v50 = vsel %vm541_vm3, %v2827_v6, %v2828_v62  ;;  %v2826_v0 = vadd.f32 %v2821_v31, %v2728_v5  ;;  %v2840_v52 = vsel %vm623_vm4, %v2836_v39, %v2837_v7 }
 0x65f   : > { %v2834_v4 = vmax.f32 %v2831_v50, %v2825_v14 }
 0x660   : > { %v2829_v59 = vrot.slane %v2826_v0, 7  ;;  %v2838_v3 = vrot.slane %v2826_v0, 1 }
 0x662   : > { %v2830_v26 = vsel %vm541_vm3, %v2828_v62, %v2829_v59  ;;  %v2832_v8 = vsel %vm541_vm3, %v2829_v59, %v2827_v6  ;;  %v2839_v10 = vsel %vm623_vm4, %v2837_v7, %v2838_v3  ;;  %v2841_v12 = vsel %vm623_vm4, %v2838_v3, %v2836_v39 }
 0x663   : > { %v2833_v24 = vmax.f32 %v2832_v8, %v2824_v37  ;;  %v2835_v15 = vmax.f32 %v2830_v26, %v2826_v0  ;;  %v2843_v17 = vmax.f32 %v2834_v4, %v2839_v10 }
 0x665   : > { %v2842_v18 = vmax.f32 %v2833_v24, %v2840_v52  ;;  %v2844_v30 = vmax.f32 %v2835_v15, %v2841_v12  ;;  %2846 = vst.msk [vmem:[#allocation2 + $0x8] sm:$0xff] %vm2448_vm0, %v2843_v17 }
 0x667   : > { %2845 = vst.msk [vmem:[#allocation2] sm:$0xff] %vm2448_vm0, %v2842_v18  ;;  %2847 = vst.msk [vmem:[#allocation2 + $0x10] sm:$0xff] %vm2448_vm0, %v2844_v30 }
 0x66e   : > { %v2848_v36 = vld [vmem:[#allocation2 + $0x1] ss:$3 sm:$0xff] }
 0x66f   : > { %v2849_v44 = vsel %vm2448_vm0, %v2848_v36, 0.0 }
 0x670   : > { %v2850_v20 = vrot.slane %v2849_v44, 4 }
 0x672   : > { %v2851_v55 = vadd.f32 %v2850_v20, %v2849_v44 }
 0x674   : > { %v2852_v43 = vrot.slane %v2851_v55, 2 }
 0x676   : > { %v2853_v29 = vadd.f32 %v2852_v43, %v2851_v55 }
 0x678   : > { %v2854_v46 = vrot.slane %v2853_v29, 1 }
 0x67a   : > { %v2855_v23 = vadd.f32 %v2854_v46, %v2853_v29 }
 0x67c   : > { %v2856_v25 = vmul.f32 0.125, %v2855_v23 }
 0x67e   : > { %3628 = vmatmul.mubr.msk.f32.vlgmr.msra.gmra.mxu1 %vm2448_vm0, %v2856_v25 }
 0x73e   : > { %v2929_v63 = vpop.f32.mrf.mxu1 }
 0x73f   : > { %v2930_v60 = vadd.f32 %v2929_v63, %v2859_v16 }
 0x740   : > { %v3629_v61 = vpop.f32.mrf.mxu1 }
 0x741   : > { %v2933_v38 = vsub.f32 0.0, %v2930_v60 }
 0x743   : > { %v2934_v11 = vmul.f32 1.442695, %v2933_v38 }
 0x745   : > { %3676 = vpow2.f32 %v2934_v11 }
 0x752   : > { %v3677_v27 = vpop.eup %3676 }
 0x753   : > { %v2936_v47 = vadd.f32 1.0, %v3677_v27 }
 0x755   : > { %3678 = vrcp.f32 %v2936_v47 }
 0x762   : > { %v3679_v28 = vpop.eup %3678 }
 0x763   : > { %v2941_v21 = vrot.slane %v3679_v28, %v2066_v33 }
 0x765   : > { %v2942_v22 = vmul.f32 %v2941_v21, %v2848_v36 }
 0x767   : > { %v2943_v32 = vadd.f32 %v2942_v22, %v2941_v21 }
 0x769   : > { %2944 = vst.msk [vmem:[%s163_s11] sm:$0xff] %vm2448_vm0, %v2943_v32 }
 0x76a   : > { %3693 = shalt.err (!%p3690_p3)
}
 0x76b   : > { %s3694_s29 = scalar_lea.hbm %s2957_s24, 128  ;;  %s3698_s5 = scalar_lea.hbm %s4978_s3, 256 }
 0x76c   : > { %p3695_p4 = scmp.ne.s32.totalorder %s2957_s24, %s3694_s29  ;;  %p3699_p9 = scmp.lt.s32.totalorder %s2957_s24, %s4978_s3 }
 0x76d   : > { %p3700_p10 = scmp.lt.s32.totalorder %s3698_s5, %s3694_s29 }
 0x76e   : > { %p3696_p7 = pnand %p3695_p4, %p3803_p5 }
 0x76f   : > { %p3701_p11 = por %p3700_p10, %p3699_p9 }
 0x770   : > { %p3697_p8 = pneg %p3696_p7 }
 0x772   : > { %p3702_p12 = pnand %p3701_p11, %p3697_p8 }
 0x774   : > { %3705 = shalt.err (!%p3702_p12)
}
 0x775   : > { %3631 = dma.vmem_to_hbm [thread:$0]  (%p3803_p5), %s2960_s17, 128, %s2957_s24, %s2946_s25  }
 0x776 PF: > { %p3637_p13 = scmp.ge.s32.totalorder %s3740_s15, 2  ;;  %s2971_s8 = sand.u32 1, %s3728_s12  }
 0x777   : > { %s2972_s9 = scalar_lea.sflag [#allocation4], %s2971_s8 }
 0x778   : > { %p3634_p0 = pnand %p3637_p13, %p3807_p6 }
 0x77a   : > { %p3635_p1 = pneg %p3634_p0 }
 0x77c   : > { %3723 = dma.done.wait (%p3635_p1), %s2972_s9, 128  }
 0x77d   : > { %3725 = vsyncadd (%p3635_p1), %s2972_s9, 4294967168  ;;  %p13_p2 = scmp.ge.s32.totalorder %s3790_s18, 4   ;;  %s4981_s12 = smov %s3732_s13 }
 0x77e   : > { %s4982_s13 = smov %s3736_s14  ;;  %s4983_s14 = smov %s3801_s21 }
 0x77f   : > { %s4984_s15 = smov %s3790_s18  ;;  %15 = sbr.rel (!%p13_p2) target bundleno = 3 (0x3), region = 76 }
 0x784   :  { %2977 = vsyncpa [#allocation4], 1 }
 0x785   :  { %2979 = vsyncpa [#allocation4 + $0x1], 1 }

</bundles_post_ra>
